<compile_context>
chip_gen: v6e
topology: v6e:2x2x1
jax: 0.10.0
libtpu: 0.0.40
codegen_flags: <defaults>
</compile_context>

<pallas_src>
import jax
import jax.numpy as jnp
import numpy as np
from jax import lax
from jax.experimental import pallas as pl
from jax.experimental.pallas import tpu as pltpu

H, W, C = 14, 14, 48
HW = H * W            # 196
LW = 256              # lane-padded width of the depthwise roll buffer
EPS = 1e-5


def _bn_scale_shift(x, gamma, beta):
    # Training-mode batch stats over HW (axis=1), one pass (sum / sum-of-sq),
    # returned as per-channel (C,1) scale & shift so BN is one mul+add.
    # NOTE: E[x^2]-E[x]^2 is clamped at 0; activations here are O(1), so
    # cancellation is not a concern at this tolerance.
    s = jnp.sum(x, axis=1, keepdims=True)
    ss = jnp.sum(x * x, axis=1, keepdims=True)
    mean = s * (1.0 / HW)
    var = jnp.maximum(ss * (1.0 / HW) - mean * mean, 0.0)
    scale = gamma * lax.rsqrt(var + EPS)
    shift = beta - mean * scale
    return scale, shift


def fused_kernel(x_ref, w1_ref, wdw_ref, w3_ref, bn_ref, mask_ref,
                 o_ref, ypad_ref):
    # ---- conv2d29: 1x1 pointwise == (C,C) @ (C,HW) on the MXU ----
    y = jnp.dot(w1_ref[...], x_ref[...], preferred_element_type=jnp.float32)

    # ---- batchnorm2d29 (batch stats) + relu19 ----
    sc1, sh1 = _bn_scale_shift(y, bn_ref[:, 0:1], bn_ref[:, 1:2])
    y = jnp.maximum(y * sc1 + sh1, 0.0)

    # ---- conv2d30: depthwise 3x3, padding=1 ----
    # Zero only the pad lanes (one aligned 128-lane column block), store the
    # image once, reload once, then 9 circular lane rolls on the XLU.
    ypad_ref[:, 128:] = jnp.zeros((C, LW - 128), jnp.float32)
    ypad_ref[:, :HW] = y
    ypad = ypad_ref[...]                                # (C, 256); lanes [HW:] == 0

    z = jnp.zeros((C, LW), jnp.float32)
    for t in range(9):                                  # static 9-tap unroll
        dh, dw = t // 3 - 1, t % 3 - 1
        s = dh * W + dw                                 # flat pixel offset of the tap
        # out[:, p] = ypad[:, (p + s) % LW]; wrap falls into the zero pad.
        shifted = pltpu.roll(ypad, (-s) % LW, axis=1)
        if dw == -1:
            shifted = shifted * mask_ref[0:1, :]        # valid where w >= 1
        elif dw == 1:
            shifted = shifted * mask_ref[1:2, :]        # valid where w <= W-2
        z = z + shifted * wdw_ref[:, t:t + 1]
    z = z[:, :HW]                                       # drop the pad lanes

    # ---- batchnorm2d30 + conv2d31: 1x1 pointwise ----
    sc2, sh2 = _bn_scale_shift(z, bn_ref[:, 2:3], bn_ref[:, 3:4])
    out = jnp.dot(w3_ref[...], z * sc2 + sh2,
                  preferred_element_type=jnp.float32)

    # ---- batchnorm2d31 ----
    sc3, sh3 = _bn_scale_shift(out, bn_ref[:, 4:5], bn_ref[:, 5:6])
    o_ref[...] = out * sc3 + sh3


# Host-side constants: horizontal validity masks for dw = -1 / +1 (pad lanes 0).
_lane = np.arange(LW)
_wi = _lane % W
_valid = _lane < HW
_MASKS = np.stack([(_valid & (_wi >= 1)),
                   (_valid & (_wi <= W - 2))], axis=0).astype(np.float32)


@jax.jit
def forward_pallas(x_nchw, p):
    assert x_nchw.shape == (1, C, H, W)
    x2d = x_nchw.reshape(C, HW)              # pure reshape, no transpose kernel
    w1 = p["w1"].reshape(C, C)               # (Cout, Cin): y = w1 @ x
    wdw = p["wdw"].reshape(C, 9)             # per-channel taps, t = kh*3 + kw
    w3 = p["w3"].reshape(C, C)
    bn = jnp.stack([p["g1"], p["b1"], p["g2"], p["b2"], p["g3"], p["b3"]],
                   axis=1)                   # (C, 6) packed BN affine params
    masks = jnp.asarray(_MASKS)              # (2, LW)

    args = (x2d, w1, wdw, w3, bn, masks)
    out2d = pl.pallas_call(
        fused_kernel,
        out_shape=jax.ShapeDtypeStruct((C, HW), jnp.float32),
        in_specs=[pl.BlockSpec(a.shape, lambda: (0, 0)) for a in args],
        out_specs=pl.BlockSpec((C, HW), lambda: (0, 0)),
        scratch_shapes=[pltpu.VMEM((C, LW), jnp.float32)],
    )(*args)
    return out2d.reshape(1, C, H, W)         # pure reshape, no transpose kernel


# ------------------------- pure-JAX reference -------------------------
def _bn_ref(x_nhwc, g, b):
    m = jnp.mean(x_nhwc, axis=(0, 1, 2), keepdims=True)
    v = jnp.mean((x_nhwc - m) ** 2, axis=(0, 1, 2), keepdims=True)
    return ((x_nhwc - m) * lax.rsqrt(v + EPS) * g.reshape(1, 1, 1, C)
            + b.reshape(1, 1, 1, C))


def forward_ref(x_nchw, p):
    dn = ("NHWC", "HWIO", "NHWC")
    hp = lax.Precision.HIGHEST
    x = jnp.transpose(x_nchw, (0, 2, 3, 1))
    y = lax.conv_general_dilated(x, jnp.transpose(p["w1"], (2, 3, 1, 0)),
                                 (1, 1), "VALID", dimension_numbers=dn,
                                 precision=hp)
    y = jnp.maximum(_bn_ref(y, p["g1"], p["b1"]), 0.0)
    y = lax.conv_general_dilated(y, jnp.transpose(p["wdw"], (2, 3, 1, 0)),
                                 (1, 1), ((1, 1), (1, 1)),
                                 dimension_numbers=dn, feature_group_count=C,
                                 precision=hp)
    y = _bn_ref(y, p["g2"], p["b2"])
    y = lax.conv_general_dilated(y, jnp.transpose(p["w3"], (2, 3, 1, 0)),
                                 (1, 1), "VALID", dimension_numbers=dn,
                                 precision=hp)
    y = _bn_ref(y, p["g3"], p["b3"])
    return jnp.transpose(y, (0, 3, 1, 2))


if __name__ == "__main__":
    key = jax.random.PRNGKey(0)
    ks = jax.random.split(key, 10)
    x = jax.random.normal(ks[0], (1, C, H, W), jnp.float32)
    params = {
        "w1":  0.1 * jax.random.normal(ks[1], (C, C, 1, 1), jnp.float32),
        "g1":  1.0 + 0.1 * jax.random.normal(ks[2], (C,), jnp.float32),
        "b1":  0.1 * jax.random.normal(ks[3], (C,), jnp.float32),
        "wdw": 0.1 * jax.random.normal(ks[4], (C, 1, 3, 3), jnp.float32),
        "g2":  1.0 + 0.1 * jax.random.normal(ks[5], (C,), jnp.float32),
        "b2":  0.1 * jax.random.normal(ks[6], (C,), jnp.float32),
        "w3":  0.1 * jax.random.normal(ks[7], (C, C, 1, 1), jnp.float32),
        "g3":  1.0 + 0.1 * jax.random.normal(ks[8], (C,), jnp.float32),
        "b3":  0.1 * jax.random.normal(ks[9], (C,), jnp.float32),
    }

    out = forward_pallas(x, params)
    out = jax.block_until_ready(out)
    assert out.shape == (1, C, H, W) and out.dtype == jnp.float32

    ref = forward_ref(x, params)
    err = float(jnp.max(jnp.abs(out - ref)))
    if err > 5e-3:
        raise AssertionError(f"Pallas kernel mismatch vs reference: max abs err {err}")
    print("KERNEL_OK")
</pallas_src>

<mosaic_0001>
module attributes {stable_mosaic.version = 11 : i64} {
  func.func @fused_kernel(%arg0: memref<48x196xf32, #tpu.memory_space<vmem>>, %arg1: memref<48x48xf32, #tpu.memory_space<vmem>>, %arg2: memref<48x9xf32, #tpu.memory_space<vmem>>, %arg3: memref<48x48xf32, #tpu.memory_space<vmem>>, %arg4: memref<48x6xf32, #tpu.memory_space<vmem>>, %arg5: memref<2x256xf32, #tpu.memory_space<vmem>>, %arg6: memref<48x196xf32, #tpu.memory_space<vmem>>, %arg7: memref<48x256xf32, #tpu.memory_space<vmem>>) attributes {dimension_semantics = [], scalar_prefetch = 0 : i64, scratch_operands = 1 : i64, tpu.core_type = #tpu.core_type<tc>} {
    %c0 = arith.constant 0 : index
    %c0_0 = arith.constant 0 : index
    %0 = vector.load %arg1[%c0, %c0_0] : memref<48x48xf32, #tpu.memory_space<vmem>>, vector<48x48xf32>
    %c0_1 = arith.constant 0 : index
    %c0_2 = arith.constant 0 : index
    %1 = vector.load %arg0[%c0_1, %c0_2] : memref<48x196xf32, #tpu.memory_space<vmem>>, vector<48x196xf32>
    %cst = arith.constant dense<0.000000e+00> : vector<48x196xf32>
    %2 = tpu.matmul %0, %1, %cst {dimension_numbers = #tpu.dot_dimension_numbers<[1], [0], [0], [1], [0, 0, 1, 1], [], []>} : vector<48x48xf32>, vector<48x196xf32>, vector<48x196xf32> -> vector<48x196xf32>
    %c0_3 = arith.constant 0 : index
    %c0_4 = arith.constant 0 : index
    %3 = vector.load %arg4[%c0_3, %c0_4] : memref<48x6xf32, #tpu.memory_space<vmem>>, vector<48x1xf32>
    %c0_5 = arith.constant 0 : index
    %c1 = arith.constant 1 : index
    %4 = vector.load %arg4[%c0_5, %c1] : memref<48x6xf32, #tpu.memory_space<vmem>>, vector<48x1xf32>
    %cst_6 = arith.constant dense<0.000000e+00> : vector<48xf32>
    %5 = vector.multi_reduction <add>, %2, %cst_6 [1] : vector<48x196xf32> to vector<48xf32>
    %6 = vector.shape_cast %5 : vector<48xf32> to vector<48x1xf32>
    %7 = arith.mulf %2, %2 : vector<48x196xf32>
    %cst_7 = arith.constant dense<0.000000e+00> : vector<48xf32>
    %8 = vector.multi_reduction <add>, %7, %cst_7 [1] : vector<48x196xf32> to vector<48xf32>
    %9 = vector.shape_cast %8 : vector<48xf32> to vector<48x1xf32>
    %cst_8 = arith.constant 0.00510204071 : f32
    %10 = vector.broadcast %cst_8 : f32 to vector<48x1xf32>
    %11 = arith.mulf %6, %10 : vector<48x1xf32>
    %cst_9 = arith.constant 0.00510204071 : f32
    %12 = vector.broadcast %cst_9 : f32 to vector<48x1xf32>
    %13 = arith.mulf %9, %12 : vector<48x1xf32>
    %14 = arith.mulf %11, %11 : vector<48x1xf32>
    %15 = arith.subf %13, %14 : vector<48x1xf32>
    %cst_10 = arith.constant 0.000000e+00 : f32
    %16 = vector.broadcast %cst_10 : f32 to vector<48x1xf32>
    %17 = arith.maximumf %15, %16 : vector<48x1xf32>
    %cst_11 = arith.constant 9.99999974E-6 : f32
    %18 = vector.broadcast %cst_11 : f32 to vector<48x1xf32>
    %19 = arith.addf %17, %18 : vector<48x1xf32>
    %20 = math.rsqrt %19 : vector<48x1xf32>
    %21 = arith.mulf %3, %20 : vector<48x1xf32>
    %22 = arith.mulf %11, %21 : vector<48x1xf32>
    %23 = arith.subf %4, %22 : vector<48x1xf32>
    %24 = vector.broadcast %21 : vector<48x1xf32> to vector<48x196xf32>
    %25 = arith.mulf %2, %24 : vector<48x196xf32>
    %26 = vector.broadcast %23 : vector<48x1xf32> to vector<48x196xf32>
    %27 = arith.addf %25, %26 : vector<48x196xf32>
    %cst_12 = arith.constant 0.000000e+00 : f32
    %28 = vector.broadcast %cst_12 : f32 to vector<48x196xf32>
    %29 = arith.maximumf %27, %28 : vector<48x196xf32>
    %cst_13 = arith.constant 0.000000e+00 : f32
    %30 = vector.broadcast %cst_13 : f32 to vector<48x128xf32>
    %c0_14 = arith.constant 0 : index
    %c128 = arith.constant 128 : index
    %31 = vector.load %arg7[%c0_14, %c128] : memref<48x256xf32, #tpu.memory_space<vmem>>, vector<48x128xf32>
    tpu.vector_store %arg7[%c0_14, %c128], %30 {strides = array<i32>} : memref<48x256xf32, #tpu.memory_space<vmem>>, vector<48x128xf32>,
    %c0_15 = arith.constant 0 : index
    %c0_16 = arith.constant 0 : index
    %32 = vector.load %arg7[%c0_15, %c0_16] : memref<48x256xf32, #tpu.memory_space<vmem>>, vector<48x196xf32>
    tpu.vector_store %arg7[%c0_15, %c0_16], %29 {strides = array<i32>} : memref<48x256xf32, #tpu.memory_space<vmem>>, vector<48x196xf32>,
    %c0_17 = arith.constant 0 : index
    %c0_18 = arith.constant 0 : index
    %33 = vector.load %arg7[%c0_17, %c0_18] : memref<48x256xf32, #tpu.memory_space<vmem>>, vector<48x256xf32>
    %cst_19 = arith.constant 0.000000e+00 : f32
    %34 = vector.broadcast %cst_19 : f32 to vector<48x256xf32>
    %c15_i32 = arith.constant 15 : i32
    %35 = tpu.dynamic_rotate %33 by %c15_i32 dim 1 : vector<48x256xf32>, i32 -> vector<48x256xf32>
    %c0_20 = arith.constant 0 : index
    %c0_21 = arith.constant 0 : index
    %36 = vector.load %arg5[%c0_20, %c0_21] : memref<2x256xf32, #tpu.memory_space<vmem>>, vector<1x256xf32>
    %37 = vector.broadcast %36 : vector<1x256xf32> to vector<48x256xf32>
    %38 = arith.mulf %35, %37 : vector<48x256xf32>
    %c0_22 = arith.constant 0 : index
    %c0_23 = arith.constant 0 : index
    %39 = vector.load %arg2[%c0_22, %c0_23] : memref<48x9xf32, #tpu.memory_space<vmem>>, vector<48x1xf32>
    %40 = vector.broadcast %39 : vector<48x1xf32> to vector<48x256xf32>
    %41 = arith.mulf %38, %40 : vector<48x256xf32>
    %42 = arith.addf %34, %41 : vector<48x256xf32>
    %c14_i32 = arith.constant 14 : i32
    %43 = tpu.dynamic_rotate %33 by %c14_i32 dim 1 : vector<48x256xf32>, i32 -> vector<48x256xf32>
    %c0_24 = arith.constant 0 : index
    %c1_25 = arith.constant 1 : index
    %44 = vector.load %arg2[%c0_24, %c1_25] : memref<48x9xf32, #tpu.memory_space<vmem>>, vector<48x1xf32>
    %45 = vector.broadcast %44 : vector<48x1xf32> to vector<48x256xf32>
    %46 = arith.mulf %43, %45 : vector<48x256xf32>
    %47 = arith.addf %42, %46 : vector<48x256xf32>
    %c13_i32 = arith.constant 13 : i32
    %48 = tpu.dynamic_rotate %33 by %c13_i32 dim 1 : vector<48x256xf32>, i32 -> vector<48x256xf32>
    %c1_26 = arith.constant 1 : index
    %c0_27 = arith.constant 0 : index
    %49 = vector.load %arg5[%c1_26, %c0_27] : memref<2x256xf32, #tpu.memory_space<vmem>>, vector<1x256xf32>
    %50 = vector.broadcast %49 : vector<1x256xf32> to vector<48x256xf32>
    %51 = arith.mulf %48, %50 : vector<48x256xf32>
    %c0_28 = arith.constant 0 : index
    %c2 = arith.constant 2 : index
    %52 = vector.load %arg2[%c0_28, %c2] : memref<48x9xf32, #tpu.memory_space<vmem>>, vector<48x1xf32>
    %53 = vector.broadcast %52 : vector<48x1xf32> to vector<48x256xf32>
    %54 = arith.mulf %51, %53 : vector<48x256xf32>
    %55 = arith.addf %47, %54 : vector<48x256xf32>
    %c1_i32 = arith.constant 1 : i32
    %56 = tpu.dynamic_rotate %33 by %c1_i32 dim 1 : vector<48x256xf32>, i32 -> vector<48x256xf32>
    %c0_29 = arith.constant 0 : index
    %c0_30 = arith.constant 0 : index
    %57 = vector.load %arg5[%c0_29, %c0_30] : memref<2x256xf32, #tpu.memory_space<vmem>>, vector<1x256xf32>
    %58 = vector.broadcast %57 : vector<1x256xf32> to vector<48x256xf32>
    %59 = arith.mulf %56, %58 : vector<48x256xf32>
    %c0_31 = arith.constant 0 : index
    %c3 = arith.constant 3 : index
    %60 = vector.load %arg2[%c0_31, %c3] : memref<48x9xf32, #tpu.memory_space<vmem>>, vector<48x1xf32>
    %61 = vector.broadcast %60 : vector<48x1xf32> to vector<48x256xf32>
    %62 = arith.mulf %59, %61 : vector<48x256xf32>
    %63 = arith.addf %55, %62 : vector<48x256xf32>
    %c0_i32 = arith.constant 0 : i32
    %64 = tpu.dynamic_rotate %33 by %c0_i32 dim 1 : vector<48x256xf32>, i32 -> vector<48x256xf32>
    %c0_32 = arith.constant 0 : index
    %c4 = arith.constant 4 : index
    %65 = vector.load %arg2[%c0_32, %c4] : memref<48x9xf32, #tpu.memory_space<vmem>>, vector<48x1xf32>
    %66 = vector.broadcast %65 : vector<48x1xf32> to vector<48x256xf32>
    %67 = arith.mulf %64, %66 : vector<48x256xf32>
    %68 = arith.addf %63, %67 : vector<48x256xf32>
    %c255_i32 = arith.constant 255 : i32
    %69 = tpu.dynamic_rotate %33 by %c255_i32 dim 1 : vector<48x256xf32>, i32 -> vector<48x256xf32>
    %c1_33 = arith.constant 1 : index
    %c0_34 = arith.constant 0 : index
    %70 = vector.load %arg5[%c1_33, %c0_34] : memref<2x256xf32, #tpu.memory_space<vmem>>, vector<1x256xf32>
    %71 = vector.broadcast %70 : vector<1x256xf32> to vector<48x256xf32>
    %72 = arith.mulf %69, %71 : vector<48x256xf32>
    %c0_35 = arith.constant 0 : index
    %c5 = arith.constant 5 : index
    %73 = vector.load %arg2[%c0_35, %c5] : memref<48x9xf32, #tpu.memory_space<vmem>>, vector<48x1xf32>
    %74 = vector.broadcast %73 : vector<48x1xf32> to vector<48x256xf32>
    %75 = arith.mulf %72, %74 : vector<48x256xf32>
    %76 = arith.addf %68, %75 : vector<48x256xf32>
    %c243_i32 = arith.constant 243 : i32
    %77 = tpu.dynamic_rotate %33 by %c243_i32 dim 1 : vector<48x256xf32>, i32 -> vector<48x256xf32>
    %c0_36 = arith.constant 0 : index
    %c0_37 = arith.constant 0 : index
    %78 = vector.load %arg5[%c0_36, %c0_37] : memref<2x256xf32, #tpu.memory_space<vmem>>, vector<1x256xf32>
    %79 = vector.broadcast %78 : vector<1x256xf32> to vector<48x256xf32>
    %80 = arith.mulf %77, %79 : vector<48x256xf32>
    %c0_38 = arith.constant 0 : index
    %c6 = arith.constant 6 : index
    %81 = vector.load %arg2[%c0_38, %c6] : memref<48x9xf32, #tpu.memory_space<vmem>>, vector<48x1xf32>
    %82 = vector.broadcast %81 : vector<48x1xf32> to vector<48x256xf32>
    %83 = arith.mulf %80, %82 : vector<48x256xf32>
    %84 = arith.addf %76, %83 : vector<48x256xf32>
    %c242_i32 = arith.constant 242 : i32
    %85 = tpu.dynamic_rotate %33 by %c242_i32 dim 1 : vector<48x256xf32>, i32 -> vector<48x256xf32>
    %c0_39 = arith.constant 0 : index
    %c7 = arith.constant 7 : index
    %86 = vector.load %arg2[%c0_39, %c7] : memref<48x9xf32, #tpu.memory_space<vmem>>, vector<48x1xf32>
    %87 = vector.broadcast %86 : vector<48x1xf32> to vector<48x256xf32>
    %88 = arith.mulf %85, %87 : vector<48x256xf32>
    %89 = arith.addf %84, %88 : vector<48x256xf32>
    %c241_i32 = arith.constant 241 : i32
    %90 = tpu.dynamic_rotate %33 by %c241_i32 dim 1 : vector<48x256xf32>, i32 -> vector<48x256xf32>
    %c1_40 = arith.constant 1 : index
    %c0_41 = arith.constant 0 : index
    %91 = vector.load %arg5[%c1_40, %c0_41] : memref<2x256xf32, #tpu.memory_space<vmem>>, vector<1x256xf32>
    %92 = vector.broadcast %91 : vector<1x256xf32> to vector<48x256xf32>
    %93 = arith.mulf %90, %92 : vector<48x256xf32>
    %c0_42 = arith.constant 0 : index
    %c8 = arith.constant 8 : index
    %94 = vector.load %arg2[%c0_42, %c8] : memref<48x9xf32, #tpu.memory_space<vmem>>, vector<48x1xf32>
    %95 = vector.broadcast %94 : vector<48x1xf32> to vector<48x256xf32>
    %96 = arith.mulf %93, %95 : vector<48x256xf32>
    %97 = arith.addf %89, %96 : vector<48x256xf32>
    %98 = vector.extract_strided_slice %97 {offsets = [0, 0], sizes = [48, 196], strides = [1, 1]} : vector<48x256xf32> to vector<48x196xf32>
    %c0_43 = arith.constant 0 : index
    %c2_44 = arith.constant 2 : index
    %99 = vector.load %arg4[%c0_43, %c2_44] : memref<48x6xf32, #tpu.memory_space<vmem>>, vector<48x1xf32>
    %c0_45 = arith.constant 0 : index
    %c3_46 = arith.constant 3 : index
    %100 = vector.load %arg4[%c0_45, %c3_46] : memref<48x6xf32, #tpu.memory_space<vmem>>, vector<48x1xf32>
    %cst_47 = arith.constant dense<0.000000e+00> : vector<48xf32>
    %101 = vector.multi_reduction <add>, %98, %cst_47 [1] : vector<48x196xf32> to vector<48xf32>
    %102 = vector.shape_cast %101 : vector<48xf32> to vector<48x1xf32>
    %103 = arith.mulf %98, %98 : vector<48x196xf32>
    %cst_48 = arith.constant dense<0.000000e+00> : vector<48xf32>
    %104 = vector.multi_reduction <add>, %103, %cst_48 [1] : vector<48x196xf32> to vector<48xf32>
    %105 = vector.shape_cast %104 : vector<48xf32> to vector<48x1xf32>
    %cst_49 = arith.constant 0.00510204071 : f32
    %106 = vector.broadcast %cst_49 : f32 to vector<48x1xf32>
    %107 = arith.mulf %102, %106 : vector<48x1xf32>
    %cst_50 = arith.constant 0.00510204071 : f32
    %108 = vector.broadcast %cst_50 : f32 to vector<48x1xf32>
    %109 = arith.mulf %105, %108 : vector<48x1xf32>
    %110 = arith.mulf %107, %107 : vector<48x1xf32>
    %111 = arith.subf %109, %110 : vector<48x1xf32>
    %cst_51 = arith.constant 0.000000e+00 : f32
    %112 = vector.broadcast %cst_51 : f32 to vector<48x1xf32>
    %113 = arith.maximumf %111, %112 : vector<48x1xf32>
    %cst_52 = arith.constant 9.99999974E-6 : f32
    %114 = vector.broadcast %cst_52 : f32 to vector<48x1xf32>
    %115 = arith.addf %113, %114 : vector<48x1xf32>
    %116 = math.rsqrt %115 : vector<48x1xf32>
    %117 = arith.mulf %99, %116 : vector<48x1xf32>
    %118 = arith.mulf %107, %117 : vector<48x1xf32>
    %119 = arith.subf %100, %118 : vector<48x1xf32>
    %c0_53 = arith.constant 0 : index
    %c0_54 = arith.constant 0 : index
    %120 = vector.load %arg3[%c0_53, %c0_54] : memref<48x48xf32, #tpu.memory_space<vmem>>, vector<48x48xf32>
    %121 = vector.broadcast %117 : vector<48x1xf32> to vector<48x196xf32>
    %122 = arith.mulf %98, %121 : vector<48x196xf32>
    %123 = vector.broadcast %119 : vector<48x1xf32> to vector<48x196xf32>
    %124 = arith.addf %122, %123 : vector<48x196xf32>
    %cst_55 = arith.constant dense<0.000000e+00> : vector<48x196xf32>
    %125 = tpu.matmul %120, %124, %cst_55 {dimension_numbers = #tpu.dot_dimension_numbers<[1], [0], [0], [1], [0, 0, 1, 1], [], []>} : vector<48x48xf32>, vector<48x196xf32>, vector<48x196xf32> -> vector<48x196xf32>
    %c0_56 = arith.constant 0 : index
    %c4_57 = arith.constant 4 : index
    %126 = vector.load %arg4[%c0_56, %c4_57] : memref<48x6xf32, #tpu.memory_space<vmem>>, vector<48x1xf32>
    %c0_58 = arith.constant 0 : index
    %c5_59 = arith.constant 5 : index
    %127 = vector.load %arg4[%c0_58, %c5_59] : memref<48x6xf32, #tpu.memory_space<vmem>>, vector<48x1xf32>
    %cst_60 = arith.constant dense<0.000000e+00> : vector<48xf32>
    %128 = vector.multi_reduction <add>, %125, %cst_60 [1] : vector<48x196xf32> to vector<48xf32>
    %129 = vector.shape_cast %128 : vector<48xf32> to vector<48x1xf32>
    %130 = arith.mulf %125, %125 : vector<48x196xf32>
    %cst_61 = arith.constant dense<0.000000e+00> : vector<48xf32>
    %131 = vector.multi_reduction <add>, %130, %cst_61 [1] : vector<48x196xf32> to vector<48xf32>
    %132 = vector.shape_cast %131 : vector<48xf32> to vector<48x1xf32>
    %cst_62 = arith.constant 0.00510204071 : f32
    %133 = vector.broadcast %cst_62 : f32 to vector<48x1xf32>
    %134 = arith.mulf %129, %133 : vector<48x1xf32>
    %cst_63 = arith.constant 0.00510204071 : f32
    %135 = vector.broadcast %cst_63 : f32 to vector<48x1xf32>
    %136 = arith.mulf %132, %135 : vector<48x1xf32>
    %137 = arith.mulf %134, %134 : vector<48x1xf32>
    %138 = arith.subf %136, %137 : vector<48x1xf32>
    %cst_64 = arith.constant 0.000000e+00 : f32
    %139 = vector.broadcast %cst_64 : f32 to vector<48x1xf32>
    %140 = arith.maximumf %138, %139 : vector<48x1xf32>
    %cst_65 = arith.constant 9.99999974E-6 : f32
    %141 = vector.broadcast %cst_65 : f32 to vector<48x1xf32>
    %142 = arith.addf %140, %141 : vector<48x1xf32>
    %143 = math.rsqrt %142 : vector<48x1xf32>
    %144 = arith.mulf %126, %143 : vector<48x1xf32>
    %145 = arith.mulf %134, %144 : vector<48x1xf32>
    %146 = arith.subf %127, %145 : vector<48x1xf32>
    %147 = vector.broadcast %144 : vector<48x1xf32> to vector<48x196xf32>
    %148 = arith.mulf %125, %147 : vector<48x196xf32>
    %149 = vector.broadcast %146 : vector<48x1xf32> to vector<48x196xf32>
    %150 = arith.addf %148, %149 : vector<48x196xf32>
    %c0_66 = arith.constant 0 : index
    %c0_67 = arith.constant 0 : index
    %151 = vector.load %arg6[%c0_66, %c0_67] : memref<48x196xf32, #tpu.memory_space<vmem>>, vector<48x196xf32>
    tpu.vector_store %arg6[%c0_66, %c0_67], %150 {strides = array<i32>} : memref<48x196xf32, #tpu.memory_space<vmem>>, vector<48x196xf32>,
    return
  }
}

</mosaic_0001>

<bundles_post_ra>
// kernel: forward_pallas.1
= control target key start
LH: loop header
LB: loop body
LE: loop exit
PB: predicated region body
PF: predicated region fallthrough
CT: control target
= control target key end

     0   :  { %v3495_v3 = vmov 0.0   ;;  %v1992_v4 = vmov 0   ;;  %v3501_v6 = vmov 2   ;;  %vm41_vm0 = vcmask 392192   ;;  %s2001_s22 = smov 1   ;;  %s2002_s30 = smov 15   ;;  %s3486_s0 = inlined_call_operand.vmem [shape: f32[48,196], index: 0, kind: input, shape index: {}]   ;;  %s3487_s2 = inlined_call_operand.vmem [shape: f32[48,9], index: 2, kind: input, shape index: {}]   ;;  %s3488_s1 = inlined_call_operand.vmem [shape: f32[48,48], index: 1, kind: input, shape index: {}]   ;;  %s3489_s4 = inlined_call_operand.vmem [shape: f32[48,6], index: 4, kind: input, shape index: {}]   ;;  %s3490_s5 = inlined_call_operand.vmem [shape: f32[2,256], index: 5, kind: input, shape index: {}]   ;;  %s3491_s3 = inlined_call_operand.vmem [shape: f32[48,48], index: 3, kind: input, shape index: {}]   ;;  %s3492_s6 = inlined_call_operand.vmem [shape: f32[48,196], index: 6, kind: output, shape index: {}]  }
   0x1   :  { %v40_v0 = vld [vmem:[%s3486_s0 + $0x58] sm:$0xff]  ;;  %v39_v1 = vld [vmem:[%s3486_s0 + $0x50] sm:$0xff]  ;;  %v38_v2 = vld [vmem:[%s3486_s0 + $0x48] sm:$0xff]  ;;  %124 = vmatprep.mubr.f32.mxu0 %v3495_v3  ;;  %408 = vst [vmem:[#allocation2 + $0x8] sm:$0xff] %v3495_v3  ;;  %1911 = vset.pattern.permute.xlu1 %v1992_v4  ;;  %v3506_v18 = vmov 1   ;;  %v3499_v28 = vmov 3  }
   0x2   :  { %409 = vst [vmem:[#allocation2 + $0x18] sm:$0xff] %v3495_v3  ;;  %410 = vst [vmem:[#allocation2 + $0x28] sm:$0xff] %v3495_v3  ;;  %80 = vmatprep.subr.mxu0 %v40_v0  ;;  %v37_v5 = vld [vmem:[%s3486_s0 + $0x40] sm:$0xff]  ;;  %1915 = vset.pattern.permute.xlu0 %v3501_v6  ;;  %v36_v7 = vld [vmem:[%s3486_s0 + $0x38] sm:$0xff]  ;;  %v3497_v29 = vmov 4   ;;  %v3493_v30 = vmov 5  }
   0x3   :  { %411 = vst [vmem:[#allocation2 + $0x38] sm:$0xff] %v3495_v3  ;;  %412 = vst [vmem:[#allocation2 + $0x48] sm:$0xff] %v3495_v3  ;;  %81 = vmatpush1.msra.mxu0 %v39_v1  ;;  %1599 = vmatprep.mubr.f32.mxu1 %v3495_v3  ;;  %v35_v8 = vld [vmem:[%s3486_s0 + $0x30] sm:$0xff]  ;;  %v34_v9 = vld [vmem:[%s3486_s0 + $0x28] sm:$0xff]  ;;  %v3505_v31 = vmov 7   ;;  %v3503_v32 = vmov 8  }
   0x4   :  { %413 = vst [vmem:[#allocation2 + $0x58] sm:$0xff] %v3495_v3  ;;  %82 = vmatprep.subr.mxu0 %v38_v2  ;;  %v33_v10 = vld [vmem:[%s3486_s0 + $0x20] sm:$0xff]  ;;  %v32_v11 = vld [vmem:[%s3486_s0 + $0x18] sm:$0xff]  ;;  %v2084_v12 = vld [vmem:[%s3487_s2 + $0x28] sm:$0xff]  ;;  %v2000_v33 = vmov 6   ;;  %vm167_vm1 = vcmask 556032  }
   0x5   :  { %83 = vmatpush1.msra.mxu0 %v37_v5  ;;  %v31_v13 = vld [vmem:[%s3486_s0 + $0x10] sm:$0xff]  ;;  %534 = vperm.xlu1 %1911, %v2084_v12   ;;  %v2093_v14 = vld [vmem:[%s3487_s2 + $0x20] sm:$0xff]  ;;  %v30_v15 = vld [vmem:[%s3486_s0 + $0x8] sm:$0xff]  ;;  %s2003_s7 = smov 14   ;;  %s2004_s8 = smov 13  }
   0x6   :  { %84 = vmatprep.subr.mxu0 %v36_v7  ;;  %725 = vperm.xlu0 %1915, %v2093_v14   ;;  %v29_v16 = vld [vmem:[%s3486_s0] sm:$0xff]  ;;  %v2110_v19 = vld [vmem:[%s3487_s2 + $0x18] sm:$0xff]  ;;  %v24_v20 = vld [vmem:[%s3488_s1 + $0x8] sm:$0xff]  ;;  %s2005_s9 = smov 127   ;;  %s2006_s10 = smov 115  }
   0x7   :  { %85 = vmatpush1.msra.mxu0 %v35_v8  ;;  %v23_v17 = vld [vmem:[%s3488_s1] sm:$0xff]  ;;  %v2122_v21 = vld [vmem:[%s3487_s2 + $0x10] sm:$0xff]  ;;  %v2136_v23 = vld [vmem:[%s3487_s2 + $0x8] sm:$0xff]  ;;  %s2007_s11 = smov 113   ;;  %s2008_s12 = smov 114  }
   0x8   :  { %86 = vmatprep.subr.mxu0 %v34_v9  ;;  %v25_v22 = vld [vmem:[%s3488_s1 + $0x10] sm:$0xff]  ;;  %v26_v24 = vld [vmem:[%s3488_s1 + $0x18] sm:$0xff]  ;;  %v2146_v25 = vld [vmem:[%s3487_s2] sm:$0xff] }
   0x9   :  { %87 = vmatpush1.msra.mxu0 %v33_v10  ;;  %1912 = vset.pattern.permute.xlu1 %v3506_v18  ;;  %v27_v26 = vld [vmem:[%s3488_s1 + $0x20] sm:$0xff]  ;;  %v28_v27 = vld [vmem:[%s3488_s1 + $0x28] sm:$0xff] }
   0xa   :  { %88 = vmatprep.subr.mxu0 %v32_v11  ;;  %619 = vperm.xlu1 %1912, %v2084_v12  }
   0xb   :  { %89 = vmatpush1.msra.mxu0 %v31_v13  ;;  %721 = vperm.xlu0 %1915, %v2110_v19  }
   0xc   :  { %90 = vmatprep.subr.mxu0 %v30_v15 }
   0xd   :  { %91 = vmatpush1.msra.mxu0 %v29_v16 }
   0xe   :  { %1880 = vmatmul.mubr.msk.f32.vlgmr.msra.gmra.mxu0 %vm41_vm0, %v23_v17  ;;  %615 = vperm.xlu1 %1912, %v2093_v14  }
   0xf   :  { %130 = vmatprep.mubr.f32.mxu0 %v3495_v3  ;;  %717 = vperm.xlu0 %1915, %v2122_v21  }
  0x12   :  { %1881 = vmatmul.mubr.msk.f32.gmra.mxu0 %vm41_vm0, %v24_v20  ;;  %1913 = vset.pattern.permute.xlu1 %v3501_v6 }
  0x13   :  { %136 = vmatprep.mubr.f32.mxu0 %v3495_v3  ;;  %729 = vperm.xlu1 %1913, %v2084_v12  }
  0x14   :  { %713 = vperm.xlu0 %1915, %v2136_v23  }
  0x16   :  { %1882 = vmatmul.mubr.msk.f32.gmra.mxu0 %vm41_vm0, %v25_v22 }
  0x17   :  { %142 = vmatprep.mubr.f32.mxu0 %v3495_v3  ;;  %1914 = vset.pattern.permute.xlu1 %v3506_v18 }
  0x18   :  { %611 = vperm.xlu1 %1914, %v2110_v19   ;;  %709 = vperm.xlu0 %1915, %v2146_v25  }
  0x1a   :  { %1883 = vmatmul.mubr.msk.f32.gmra.mxu0 %vm41_vm0, %v26_v24 }
  0x1b   :  { %148 = vmatprep.mubr.f32.mxu0 %v3495_v3 }
  0x1c   :  { %1916 = vset.pattern.permute.xlu1 %v3499_v28  ;;  %1924 = vset.pattern.permute.xlu0 %v3499_v28 }
  0x1d   :  { %826 = vperm.xlu1 %1916, %v2084_v12   ;;  %822 = vperm.xlu0 %1924, %v2093_v14  }
  0x1e   :  { %1884 = vmatmul.mubr.msk.f32.gmra.mxu0 %vm41_vm0, %v27_v26 }
  0x1f   :  { %154 = vmatprep.mubr.f32.mxu0 %v3495_v3 }
  0x21   :  { %1917 = vset.pattern.permute.xlu1 %v1992_v4  ;;  %818 = vperm.xlu0 %1924, %v2110_v19  }
  0x22   :  { %1885 = vmatmul.mubr.msk.f32.gmra.mxu0 %vm41_vm0, %v28_v27  ;;  %519 = vperm.xlu1 %1917, %v2122_v21  }
  0x25   :  { %814 = vperm.xlu0 %1924, %v2122_v21  }
  0x26   :  { %1918 = vset.pattern.permute.xlu1 %v3497_v29 }
  0x27   :  { %874 = vperm.xlu1 %1918, %v2084_v12  }
  0x29   :  { %810 = vperm.xlu0 %1924, %v2136_v23  }
  0x2b   :  { %1919 = vset.pattern.permute.xlu1 %v1992_v4 }
  0x2c   :  { %514 = vperm.xlu1 %1919, %v2136_v23  }
  0x2d   :  { %1929 = vset.pattern.permute.xlu0 %v3497_v29 }
  0x2e   :  { %858 = vperm.xlu0 %1929, %v2136_v23  }
  0x30   :  { %1920 = vset.pattern.permute.xlu1 %v3497_v29 }
  0x31   :  { %870 = vperm.xlu1 %1920, %v2093_v14  }
  0x32   :  { %854 = vperm.xlu0 %1929, %v2146_v25  }
  0x35   :  { %1921 = vset.pattern.permute.xlu1 %v3493_v30 }
  0x36   :  { %971 = vperm.xlu1 %1921, %v2084_v12   ;;  %1932 = vset.pattern.permute.xlu0 %v3493_v30 }
  0x37   :  { %959 = vperm.xlu0 %1932, %v2122_v21  }
  0x3a   :  { %1922 = vset.pattern.permute.xlu1 %v3497_v29 }
  0x3b   :  { %866 = vperm.xlu1 %1922, %v2110_v19   ;;  %955 = vperm.xlu0 %1932, %v2136_v23  }
  0x3f   :  { %1923 = vset.pattern.permute.xlu1 %v3493_v30  ;;  %951 = vperm.xlu0 %1932, %v2146_v25  }
  0x40   :  { %967 = vperm.xlu1 %1923, %v2093_v14  }
  0x43   :  { %1933 = vset.pattern.permute.xlu0 %v2000_v33 }
  0x44   :  { %1925 = vset.pattern.permute.xlu1 %v3497_v29 }
  0x45   :  { %862 = vperm.xlu1 %1925, %v2122_v21  }
  0x49   :  { %1926 = vset.pattern.permute.xlu1 %v3493_v30 }
  0x4a   :  { %963 = vperm.xlu1 %1926, %v2110_v19  }
  0x4e   :  { %1927 = vset.pattern.permute.xlu1 %v3505_v31 }
  0x4f   :  { %1153 = vperm.xlu1 %1927, %v2084_v12  }
  0x53   :  { %1928 = vset.pattern.permute.xlu1 %v3499_v28 }
  0x54   :  { %806 = vperm.xlu1 %1928, %v2146_v25  }
  0x58   :  { %1930 = vset.pattern.permute.xlu1 %v3505_v31 }
  0x59   :  { %1149 = vperm.xlu1 %1930, %v2093_v14  }
  0x5d   :  { %1931 = vset.pattern.permute.xlu1 %v3503_v32 }
  0x5e   :  { %1250 = vperm.xlu1 %1931, %v2084_v12  }
  0x62   :  { %1935 = vset.pattern.permute.xlu1 %v1992_v4 }
  0x80   :  { %v2275_v33 = vpop.permute.xlu1 %534 }
  0x81   :  { %3542 = vst [vmem:[#allocation3_spill] sm:$0xff] %v2275_v33 }
  0xce   :  { %v2203_v34 = vpop.f32.mrf.mxu0 }
  0xcf   :  { %v192_v42 = vmul.f32 %v2203_v34, %v2203_v34 }
  0xd0   :  { %v2205_v35 = vpop.f32.mrf.mxu0 }
  0xd1   :  { %v193_v36 = vmul.f32 %v2205_v35, %v2205_v35  ;;  %v168_v37 = vsel %vm167_vm1, %v2205_v35, 0.0 }
  0xd2   :  { %v2211_v38 = vpop.f32.mrf.mxu0  ;;  %v169_v39 = vadd.f32 %v168_v37, %v2203_v34 }
  0xd3   :  { %v204_v40 = vsel %vm167_vm1, %v193_v36, 0.0  ;;  %v194_v43 = vmul.f32 %v2211_v38, %v2211_v38  ;;  %v2277_v36 = vpop.permute.xlu1 %619 }
  0xd4   :  { %170 = vadd.xlane.f32.xlu1 %v169_v39  ;;  %v2215_v41 = vpop.f32.mrf.mxu0  ;;  %v205_v47 = vadd.f32 %v204_v40, %v192_v42  ;;  %3543 = vst [vmem:[#allocation4_spill] sm:$0xff] %v2277_v36 }
  0xd5   :  { %v195_v44 = vmul.f32 %v2215_v41, %v2215_v41  ;;  %v172_v45 = vsel %vm167_vm1, %v2215_v41, 0.0 }
  0xd6   :  { %v2225_v46 = vpop.f32.mrf.mxu0  ;;  %v173_v51 = vadd.f32 %v172_v45, %v2211_v38 }
  0xd7   :  { %v208_v48 = vsel %vm167_vm1, %v195_v44, 0.0  ;;  %v196_v52 = vmul.f32 %v2225_v46, %v2225_v46  ;;  %v2279_v37 = vpop.permute.xlu1 %615  ;;  %v2294_v44 = vpop.permute.xlu0 %725 }
  0xd8   :  { %206 = vadd.xlane.f32.xlu1 %v205_v47  ;;  %v2228_v49 = vpop.f32.mrf.mxu0  ;;  %v209_v50 = vadd.f32 %v208_v48, %v194_v43 }
  0xd9   :  { %v197_v53 = vmul.f32 %v2228_v49, %v2228_v49  ;;  %v176_v54 = vsel %vm167_vm1, %v2228_v49, 0.0 }
  0xda   :  { %210 = vadd.xlane.f32.xlu0 %v209_v50  ;;  %v2237_v55 = vpop.f32.mrf.mxu0  ;;  %v177_v59 = vadd.f32 %v176_v54, %v2225_v46 }
  0xdb   :  { %v212_v56 = vsel %vm167_vm1, %v197_v53, 0.0  ;;  %v198_v60 = vmul.f32 %v2237_v55, %v2237_v55  ;;  %v2281_v39 = vpop.permute.xlu1 %729 }
  0xdc   :  { %174 = vadd.xlane.f32.xlu1 %v173_v51  ;;  %v2240_v57 = vpop.f32.mrf.mxu0  ;;  %v213_v58 = vadd.f32 %v212_v56, %v196_v52  ;;  %3544 = vst [vmem:[#allocation5_spill] sm:$0xff] %v2281_v39 }
  0xdd   :  { %v199_v61 = vmul.f32 %v2240_v57, %v2240_v57  ;;  %v180_v62 = vsel %vm167_vm1, %v2240_v57, 0.0 }
  0xde   :  { %214 = vadd.xlane.f32.xlu0 %v213_v58  ;;  %v2249_v63 = vpop.f32.mrf.mxu0  ;;  %v181_v5 = vadd.f32 %v180_v62, %v2237_v55 }
  0xdf   :  { %v216_v0 = vsel %vm167_vm1, %v199_v61, 0.0  ;;  %v200_v11 = vmul.f32 %v2249_v63, %v2249_v63  ;;  %v2284_v40 = vpop.permute.xlu1 %611 }
  0xe0   :  { %178 = vadd.xlane.f32.xlu1 %v177_v59  ;;  %v217_v1 = vadd.f32 %v216_v0, %v198_v60  ;;  %v2252_v2 = vpop.f32.mrf.mxu0 }
  0xe1   :  { %v201_v7 = vmul.f32 %v2252_v2, %v2252_v2  ;;  %v184_v8 = vsel %vm167_vm1, %v2252_v2, 0.0 }
  0xe2   :  { %218 = vadd.xlane.f32.xlu0 %v217_v1  ;;  %v185_v9 = vadd.f32 %v184_v8, %v2249_v63  ;;  %v2260_v10 = vpop.f32.mrf.mxu0 }
  0xe3   :  { %v220_v13 = vsel %vm167_vm1, %v201_v7, 0.0  ;;  %v202_v16 = vmul.f32 %v2260_v10, %v2260_v10  ;;  %v2287_v42 = vpop.permute.xlu1 %826 }
  0xe4   :  { %182 = vadd.xlane.f32.xlu1 %v181_v5  ;;  %v2265_v15 = vpop.f32.mrf.mxu0  ;;  %v221_v20 = vadd.f32 %v220_v13, %v200_v11  ;;  %3545 = vst [vmem:[#allocation6_spill] sm:$0xff] %v2287_v42 }
  0xe5   :  { %v203_v17 = vmul.f32 %v2265_v15, %v2265_v15  ;;  %v188_v22 = vsel %vm167_vm1, %v2265_v15, 0.0 }
  0xe6   :  { %186 = vadd.xlane.f32.xlu0 %v185_v9  ;;  %v189_v27 = vadd.f32 %v188_v22, %v2260_v10 }
  0xe7   :  { %v224_v24 = vsel %vm167_vm1, %v203_v17, 0.0  ;;  %v2291_v43 = vpop.permute.xlu1 %519 }
  0xe8   :  { %v225_v26 = vadd.f32 %v224_v24, %v202_v16 }
  0xea   :  { %222 = vadd.xlane.f32.xlu0 %v221_v20  ;;  %226 = vadd.xlane.f32.xlu1 %v225_v26 }
  0xeb   :  { %v2296_v45 = vpop.permute.xlu1 %874 }
  0xec   :  { %3546 = vst [vmem:[#allocation7_spill] sm:$0xff] %v2296_v45 }
  0xee   :  { %190 = vadd.xlane.f32.xlu0 %v189_v27 }
  0xef   :  { %v2302_v47 = vpop.permute.xlu1 %514 }
  0xf3   :  { %v2308_v50 = vpop.permute.xlu1 %870 }
  0xf7   :  { %v2313_v52 = vpop.permute.xlu1 %971 }
  0xf8   :  { %3547 = vst [vmem:[#allocation8_spill] sm:$0xff] %v2313_v52 }
  0xfb   :  { %v2317_v54 = vpop.permute.xlu1 %866 }
  0xff   :  { %v2321_v56 = vpop.permute.xlu1 %967 }
 0x103   :  { %v2325_v59 = vpop.permute.xlu1 %862 }
 0x104   :  { %1068 = vperm.xlu0 %1933, %v2084_v12   ;;  %v2299_v12 = vpop.permute.xlu0 %721 }
 0x107   :  { %v2329_v61 = vpop.permute.xlu1 %963 }
 0x108   :  { %1064 = vperm.xlu0 %1933, %v2093_v14   ;;  %v2305_v48 = vpop.permute.xlu0 %717 }
 0x10b   :  { %v2333_v0 = vpop.permute.xlu1 %1153 }
 0x10c   :  { %1060 = vperm.xlu0 %1933, %v2110_v19   ;;  %v2311_v51 = vpop.permute.xlu0 %713  ;;  %3549 = vst [vmem:[#allocation10_spill] sm:$0xff] %v2333_v0 }
 0x10f   :  { %v2337_v5 = vpop.permute.xlu1 %806 }
 0x110   :  { %1056 = vperm.xlu0 %1933, %v2122_v21   ;;  %v2315_v53 = vpop.permute.xlu0 %709  ;;  %3550 = vst [vmem:[#allocation11_spill] sm:$0xff] %v2337_v5 }
 0x111   :  { %3548 = vst [vmem:[#allocation9_spill] sm:$0xff] %v2315_v53 }
 0x113   :  { %v2341_v8 = vpop.permute.xlu1 %1149 }
 0x114   :  { %1052 = vperm.xlu0 %1933, %v2136_v23  }
 0x117   :  { %v2345_v11 = vpop.permute.xlu1 %1250 }
 0x118   :  { %1048 = vperm.xlu0 %1933, %v2146_v25   ;;  %3552 = vst [vmem:[#allocation13_spill] sm:$0xff] %v2345_v11 }
 0x11c   :  { %1934 = vset.pattern.permute.xlu0 %v1992_v4  ;;  %v2319_v4 = vpop.permute.xlu0 %822 }
 0x11d   :  { %529 = vperm.xlu0 %1934, %v2093_v14  }
 0x120   :  { %v2323_v58 = vpop.permute.xlu0 %818 }
 0x121   :  { %524 = vperm.xlu0 %1934, %v2110_v19  }
 0x124   :  { %v2327_v60 = vpop.permute.xlu0 %814 }
 0x125   :  { %509 = vperm.xlu0 %1934, %v2146_v25  }
 0x128   :  { %v2331_v62 = vpop.permute.xlu0 %810 }
 0x12c   :  { %v2335_v1 = vpop.permute.xlu0 %858 }
 0x130   :  { %v2339_v7 = vpop.permute.xlu0 %854 }
 0x131   :  { %3551 = vst [vmem:[#allocation12_spill] sm:$0xff] %v2339_v7 }
 0x134   :  { %v2343_v9 = vpop.permute.xlu0 %959 }
 0x138   :  { %v2347_v13 = vpop.permute.xlu0 %955 }
 0x13c   :  { %v2349_v20 = vpop.permute.xlu0 %951 }
 0x13d   :  { %3553 = vst [vmem:[#allocation14_spill] sm:$0xff] %v2349_v20 }
 0x15d   :  { %v171_v16 = vpop.xlane.xlu1 %170 }
 0x15e   :  { %v228_v17 = vmul.f32 0.0051020407, %v171_v16 }
 0x160   :  { %v240_v24 = vmul.f32 %v228_v17, %v228_v17 }
 0x161   :  { %v207_v22 = vpop.xlane.xlu1 %206 }
 0x162   :  { %v234_v26 = vmul.f32 0.0051020407, %v207_v22 }
 0x163   :  { %v211_v27 = vpop.xlane.xlu0 %210 }
 0x164   :  { %v246_v30 = vsub.f32 %v234_v26, %v240_v24  ;;  %v235_v28 = vmul.f32 0.0051020407, %v211_v27 }
 0x165   :  { %v175_v3 = vpop.xlane.xlu1 %174 }
 0x166   :  { %v252_v29 = vmax.f32 %v246_v30, 0.0  ;;  %v229_v6 = vmul.f32 0.0051020407, %v175_v3 }
 0x167   :  { %v215_v32 = vpop.xlane.xlu0 %214 }
 0x168   :  { %v258_v31 = vadd.f32 1e-05, %v252_v29  ;;  %v241_v18 = vmul.f32 %v229_v6, %v229_v6  ;;  %v236_v52 = vmul.f32 0.0051020407, %v215_v32 }
 0x169   :  { %v179_v0 = vpop.xlane.xlu1 %178 }
 0x16a   :  { %1953 = vrsqrt.f32 %v258_v31  ;;  %v247_v11 = vsub.f32 %v235_v28, %v241_v18  ;;  %v230_v7 = vmul.f32 0.0051020407, %v179_v0 }
 0x16b   :  { %v219_v16 = vpop.xlane.xlu0 %218 }
 0x16c   :  { %v253_v45 = vmax.f32 %v247_v11, 0.0  ;;  %v242_v20 = vmul.f32 %v230_v7, %v230_v7  ;;  %v237_v39 = vmul.f32 0.0051020407, %v219_v16 }
 0x16d   :  { %v183_v5 = vpop.xlane.xlu1 %182 }
 0x16e   :  { %v259_v42 = vadd.f32 1e-05, %v253_v45  ;;  %v248_v22 = vsub.f32 %v236_v52, %v242_v20  ;;  %v231_v24 = vmul.f32 0.0051020407, %v183_v5  ;;  %v2354_v45 = vld [vmem:[%s3489_s4] sm:$0xff] }
 0x16f   :  { %v187_v26 = vpop.xlane.xlu0 %186 }
 0x170   :  { %1955 = vrsqrt.f32 %v259_v42  ;;  %v254_v30 = vmax.f32 %v248_v22, 0.0  ;;  %v243_v3 = vmul.f32 %v231_v24, %v231_v24  ;;  %v232_v27 = vmul.f32 0.0051020407, %v187_v26 }
 0x172   :  { %v260_v29 = vadd.f32 1e-05, %v254_v30  ;;  %v249_v33 = vsub.f32 %v237_v39, %v243_v3  ;;  %v244_v53 = vmul.f32 %v232_v27, %v232_v27  ;;  %v2360_v30 = vld [vmem:[%s3489_s4 + $0x8] sm:$0xff] }
 0x173   :  { %v223_v31 = vpop.xlane.xlu0 %222  ;;  %v227_v32 = vpop.xlane.xlu1 %226 }
 0x174   :  { %1957 = vrsqrt.f32 %v260_v29  ;;  %v255_v18 = vmax.f32 %v249_v33, 0.0  ;;  %v238_v28 = vmul.f32 0.0051020407, %v223_v31  ;;  %v239_v11 = vmul.f32 0.0051020407, %v227_v32 }
 0x176   :  { %v261_v52 = vadd.f32 1e-05, %v255_v18  ;;  %v250_v0 = vsub.f32 %v238_v28, %v244_v53  ;;  %v2367_v18 = vld [vmem:[%s3489_s4 + $0x10] sm:$0xff] }
 0x177   :  { %v1954_v5 = vpop.eup %1953  ;;  %v191_v42 = vpop.xlane.xlu0 %190 }
 0x178   :  { %1959 = vrsqrt.f32 %v261_v52  ;;  %v256_v20 = vmax.f32 %v250_v0, 0.0  ;;  %v233_v16 = vmul.f32 0.0051020407, %v191_v42  ;;  %v270_v39 = vmul.f32 %v1954_v5, %v2354_v45  ;;  %v2373_v0 = vld [vmem:[%s3489_s4 + $0x18] sm:$0xff] }
 0x17a   :  { %v262_v22 = vadd.f32 1e-05, %v256_v20  ;;  %v245_v26 = vmul.f32 %v233_v16, %v233_v16  ;;  %314 = vperm.xlu0 %1934, %v270_v39   ;;  %v276_v33 = vmul.f32 %v270_v39, %v228_v17 }
 0x17c   :  { %1961 = vrsqrt.f32 %v262_v22  ;;  %v251_v3 = vsub.f32 %v239_v11, %v245_v26  ;;  %288 = vrot.lane.b32.xlu1 %v276_v33, %s2001_s22 }
 0x17d   :  { %v1956_v53 = vpop.eup %1955 }
 0x17e   :  { %v271_v29 = vmul.f32 %v1956_v53, %v2360_v30  ;;  %v257_v31 = vmax.f32 %v251_v3, 0.0 }
 0x180   :  { %v263_v17 = vadd.f32 1e-05, %v257_v31  ;;  %319 = vperm.xlu0 %1934, %v271_v29   ;;  %v277_v32 = vmul.f32 %v271_v29, %v229_v6  ;;  %v165_v6 = vld [vmem:[%s3489_s4 + $0x20] sm:$0xff]  ;;  %v3554_v29 = vmov 1  }
 0x181   :  { %v1958_v28 = vpop.eup %1957 }
 0x182   :  { %v272_v52 = vmul.f32 %v1958_v28, %v2367_v18  ;;  %1963 = vrsqrt.f32 %v263_v17 }
 0x184   :  { %v278_v5 = vmul.f32 %v272_v52, %v230_v7  ;;  %290 = vrot.lane.b32.xlu0 %v277_v32, %s2001_s22  ;;  %v166_v7 = vld [vmem:[%s3489_s4 + $0x28] sm:$0xff] }
 0x185   :  { %v1960_v42 = vpop.eup %1959 }
 0x186   :  { %v273_v11 = vmul.f32 %v1960_v42, %v2373_v0  ;;  %292 = vrot.lane.b32.xlu1 %v278_v5, %s2001_s22 }
 0x188   :  { %v279_v20 = vmul.f32 %v273_v11, %v231_v24  ;;  %324 = vperm.xlu0 %1934, %v272_v52   ;;  %v3555_v24 = vmov 7  }
 0x189   :  { %v1962_v39 = vpop.eup %1961 }
 0x18a   :  { %294 = vrot.lane.b32.xlu1 %v279_v20, %s2001_s22  ;;  %v274_v22 = vmul.f32 %v1962_v39, %v165_v6 }
 0x18c   :  { %329 = vperm.xlu0 %1934, %v273_v11   ;;  %v280_v26 = vmul.f32 %v274_v22, %v232_v27  ;;  %v3556_v27 = vmov 8  }
 0x18e   :  { %334 = vperm.xlu1 %1935, %v274_v22  }
 0x18f   :  { %v1964_v33 = vpop.eup %1963 }
 0x190   :  { %v275_v3 = vmul.f32 %v1964_v33, %v166_v7 }
 0x192   :  { %339 = vperm.xlu0 %1934, %v275_v3   ;;  %296 = vrot.lane.b32.xlu1 %v280_v26, %s2001_s22  ;;  %v281_v53 = vmul.f32 %v275_v3, %v233_v16  ;;  %v2401_v16 = vpop.permute.xlu0 %1068 }
 0x193   :  { %1939 = vset.pattern.permute.xlu1 %v3554_v29  ;;  %3557 = vst [vmem:[#allocation15_spill] sm:$0xff] %v2401_v16 }
 0x196   :  { %298 = vrot.lane.b32.xlu0 %v281_v53, %s2001_s22  ;;  %v2404_v31 = vpop.permute.xlu0 %1064 }
 0x197   :  { %1936 = vset.pattern.permute.xlu0 %v3555_v24 }
 0x19a   :  { %1145 = vperm.xlu0 %1936, %v2110_v19   ;;  %v2406_v17 = vpop.permute.xlu0 %1060 }
 0x19e   :  { %1141 = vperm.xlu0 %1936, %v2122_v21  }
 0x1a2   :  { %1137 = vperm.xlu0 %1936, %v2136_v23  }
 0x1a6   :  { %1133 = vperm.xlu0 %1936, %v2146_v25  }
 0x1aa   :  { %1937 = vset.pattern.permute.xlu0 %v3556_v27 }
 0x1ab   :  { %1246 = vperm.xlu0 %1937, %v2093_v14   ;;  %v2408_v14 = vpop.permute.xlu0 %1056 }
 0x1af   :  { %1242 = vperm.xlu0 %1937, %v2110_v19   ;;  %v2410_v19 = vpop.permute.xlu0 %1052 }
 0x1b3   :  { %1238 = vperm.xlu0 %1937, %v2122_v21   ;;  %v2412_v28 = vpop.permute.xlu0 %1048 }
 0x1b4   :  { %3558 = vst [vmem:[#allocation16_spill] sm:$0xff] %v2412_v28 }
 0x1b7   :  { %1234 = vperm.xlu0 %1937, %v2136_v23   ;;  %v2414_v32 = vpop.permute.xlu0 %529 }
 0x1bb   :  { %1938 = vset.pattern.permute.xlu0 %v3554_v29  ;;  %v2416_v52 = vpop.permute.xlu0 %524 }
 0x1bc   :  { %607 = vperm.xlu0 %1938, %v2122_v21  }
 0x1bf   :  { %v2419_v5 = vpop.permute.xlu0 %509 }
 0x1c0   :  { %603 = vperm.xlu0 %1938, %v2136_v23   ;;  %3559 = vst [vmem:[#allocation17_spill] sm:$0xff] %v2419_v5 }
 0x1c4   :  { %599 = vperm.xlu0 %1938, %v2146_v25  }
 0x1ee   :  { %v289_v21 = vpop.permute.xlu1 %288 }
 0x1ef   :  { %v306_v23 = vsub.f32 %v2354_v45, %v289_v21 }
 0x1f1   :  { %356 = vperm.xlu0 %1938, %v306_v23  }
 0x1f5   :  { %1940 = vset.pattern.permute.xlu0 %v3556_v27  ;;  %v315_v42 = vpop.permute.xlu0 %314 }
 0x1f8   :  { %v293_v20 = vpop.permute.xlu1 %292 }
 0x1f9   :  { %v308_v26 = vsub.f32 %v2367_v18, %v293_v20 }
 0x1fb   :  { %v320_v11 = vpop.permute.xlu0 %319 }
 0x1fc   :  { %v295_v3 = vpop.permute.xlu1 %294 }
 0x1fd   :  { %v309_v53 = vsub.f32 %v2373_v0, %v295_v3 }
 0x1ff   :  { %v291_v39 = vpop.permute.xlu0 %290 }
 0x200   :  { %v307_v22 = vsub.f32 %v2360_v30, %v291_v39  ;;  %v3560_v30 = vmov 2  }
 0x202   :  { %361 = vperm.xlu1 %1939, %v307_v22  }
 0x203   :  { %v325_v33 = vpop.permute.xlu0 %324 }
 0x206   :  { %366 = vperm.xlu1 %1939, %v308_v26  }
 0x207   :  { %v330_v45 = vpop.permute.xlu0 %329 }
 0x209   :  { %v2425_v29 = vpop.permute.xlu1 %334 }
 0x20a   :  { %371 = vperm.xlu1 %1939, %v309_v53  }
 0x20d   :  { %v297_v24 = vpop.permute.xlu1 %296  ;;  %v2427_v27 = vpop.permute.xlu0 %339 }
 0x20e   :  { %v310_v21 = vsub.f32 %v165_v6, %v297_v24  ;;  %v342_v24 = vmul.f32 %v315_v42, %v2203_v34  ;;  %v344_v34 = vmul.f32 %v320_v11, %v2211_v38 }
 0x210   :  { %376 = vperm.xlu1 %1939, %v310_v21   ;;  %v343_v21 = vmul.f32 %v315_v42, %v2205_v35  ;;  %v345_v35 = vmul.f32 %v320_v11, %v2215_v41 }
 0x211   :  { %v299_v23 = vpop.permute.xlu0 %298 }
 0x212   :  { %v311_v28 = vsub.f32 %v166_v7, %v299_v23 }
 0x214   :  { %381 = vperm.xlu1 %1939, %v311_v28  }
 0x215   :  { %v2430_v18 = vpop.permute.xlu0 %1145 }
 0x218   :  { %1941 = vset.pattern.permute.xlu1 %v3560_v30 }
 0x219   :  { %v2432_v20 = vpop.permute.xlu0 %1141 }
 0x21d   :  { %v2434_v0 = vpop.permute.xlu0 %1137 }
 0x21e   :  { %3561 = vst [vmem:[#allocation18_spill] sm:$0xff] %v2434_v0 }
 0x221   :  { %v2436_v39 = vpop.permute.xlu0 %1133 }
 0x222   :  { %3562 = vst [vmem:[#allocation19_spill] sm:$0xff] %v2436_v39 }
 0x226   :  { %v2438_v22 = vpop.permute.xlu0 %1246 }
 0x227   :  { %3563 = vst [vmem:[#allocation20_spill] sm:$0xff] %v2438_v22 }
 0x22a   :  { %v2440_v26 = vpop.permute.xlu0 %1242 }
 0x22e   :  { %v2442_v3 = vpop.permute.xlu0 %1238 }
 0x232   :  { %v2444_v6 = vpop.permute.xlu0 %1234 }
 0x233   :  { %3564 = vst [vmem:[#allocation21_spill] sm:$0xff] %v2444_v6 }
 0x237   :  { %v2446_v7 = vpop.permute.xlu0 %607 }
 0x23b   :  { %v2448_v28 = vpop.permute.xlu0 %603 }
 0x23f   :  { %v2450_v53 = vpop.permute.xlu0 %599 }
 0x240   :  { %3565 = vst [vmem:[#allocation22_spill] sm:$0xff] %v2450_v53 }
 0x26c   :  { %v357_v23 = vpop.permute.xlu0 %356 }
 0x26d   :  { %v384_v39 = vadd.f32 %v357_v23, %v342_v24  ;;  %v385_v0 = vadd.f32 %v357_v23, %v343_v21  ;;  %v347_v24 = vmul.f32 %v325_v33, %v2228_v49 }
 0x26f   :  { %v2454_v16 = vmax.f32 %v384_v39, 0.0  ;;  %v397_v36 = vmax.f32 %v385_v0, 0.0  ;;  %v346_v39 = vmul.f32 %v325_v33, %v2225_v46  ;;  %v349_v46 = vmul.f32 %v330_v45, %v2240_v57 }
 0x270   :  { %v351_v57 = vmul.f32 %v2425_v29, %v2252_v2 }
 0x271   :  { %414 = vst [vmem:[#allocation2] sm:$0xff] %v2454_v16  ;;  %415 = vst.msk [vmem:[#allocation2 + $0x8] sm:$0xff] %vm167_vm1, %v397_v36  ;;  %438 = vrot.lane.b32.xlu1 %v2454_v16, %s2002_s30 }
 0x278   :  { %v2460_v6 = vld [vmem:[#allocation2 + $0x8] sm:$0xff] }
 0x279   :  { %573 = vrot.lane.b32.xlu0 %v2460_v6, %s2003_s7  ;;  %450 = vrot.lane.b32.xlu1 %v2460_v6, %s2002_s30 }
 0x27d   :  { %v362_v42 = vpop.permute.xlu1 %361  ;;  %658 = vrot.lane.b32.xlu0 %v2460_v6, %s2004_s8  ;;  %561 = vrot.lane.b32.xlu1 %v2454_v16, %s2003_s7 }
 0x27e   :  { %v386_v36 = vadd.f32 %v362_v42, %v344_v34  ;;  %v387_v0 = vadd.f32 %v362_v42, %v345_v35  ;;  %v348_v34 = vmul.f32 %v330_v45, %v2237_v55  ;;  %v350_v55 = vmul.f32 %v2425_v29, %v2249_v63 }
 0x27f   :  { %v353_v63 = vmul.f32 %v2427_v27, %v2265_v15 }
 0x280   :  { %v2474_v21 = vmax.f32 %v386_v36, 0.0  ;;  %v399_v23 = vmax.f32 %v387_v0, 0.0 }
 0x281   :  { %v367_v38 = vpop.permute.xlu1 %366  ;;  %756 = vrot.lane.b32.xlu0 %v2454_v16, %s2001_s22  ;;  %646 = vrot.lane.b32.xlu1 %v2454_v16, %s2004_s8 }
 0x282   :  { %417 = vst.msk [vmem:[#allocation2 + $0x18] sm:$0xff] %vm167_vm1, %v399_v23  ;;  %v388_v41 = vadd.f32 %v367_v38, %v346_v39  ;;  %v389_v11 = vadd.f32 %v367_v38, %v347_v24  ;;  %v352_v38 = vmul.f32 %v2427_v27, %v2260_v10 }
 0x284   :  { %v2483_v35 = vmax.f32 %v388_v41, 0.0  ;;  %v401_v49 = vmax.f32 %v389_v11, 0.0 }
 0x285   :  { %v372_v33 = vpop.permute.xlu1 %371  ;;  %768 = vrot.lane.b32.xlu1 %v2460_v6, %s2001_s22  ;;  %440 = vrot.lane.b32.xlu0 %v2474_v21, %s2002_s30 }
 0x286   :  { %419 = vst.msk [vmem:[#allocation2 + $0x28] sm:$0xff] %vm167_vm1, %v401_v49  ;;  %v390_v42 = vadd.f32 %v372_v33, %v348_v34  ;;  %v391_v36 = vadd.f32 %v372_v33, %v349_v46 }
 0x288   :  { %v2490_v0 = vmax.f32 %v390_v42, 0.0  ;;  %v403_v39 = vmax.f32 %v391_v36, 0.0 }
 0x289   :  { %901 = vrot.lane.b32.xlu1 %v2454_v16, %s2005_s9  ;;  %563 = vrot.lane.b32.xlu0 %v2474_v21, %s2003_s7  ;;  %v2512_v46 = vld [vmem:[#allocation2 + $0x18] sm:$0xff] }
 0x28a   :  { %421 = vst.msk [vmem:[#allocation2 + $0x38] sm:$0xff] %vm167_vm1, %v403_v39 }
 0x28b   :  { %v377_v45 = vpop.permute.xlu1 %376 }
 0x28c   :  { %v392_v24 = vadd.f32 %v377_v45, %v350_v55  ;;  %v393_v23 = vadd.f32 %v377_v45, %v351_v57 }
 0x28d   :  { %913 = vrot.lane.b32.xlu1 %v2460_v6, %s2005_s9  ;;  %648 = vrot.lane.b32.xlu0 %v2474_v21, %s2004_s8  ;;  %v2529_v27 = vld [vmem:[#allocation2 + $0x28] sm:$0xff] }
 0x28e   :  { %v2509_v41 = vmax.f32 %v392_v24, 0.0  ;;  %v405_v2 = vmax.f32 %v393_v23, 0.0  ;;  %v462_v23 = vlaneseq }
 0x28f   :  { %v382_v29 = vpop.permute.xlu1 %381 }
 0x290   :  { %423 = vst.msk [vmem:[#allocation2 + $0x48] sm:$0xff] %vm167_vm1, %v405_v2  ;;  %v394_v11 = vadd.f32 %v382_v29, %v352_v38  ;;  %v395_v34 = vadd.f32 %v382_v29, %v353_v63  ;;  %v480_v2 = vshrl.u32 %v462_v23, 7 }
 0x291   :  { %998 = vrot.lane.b32.xlu1 %v2454_v16, %s2006_s10  ;;  %770 = vrot.lane.b32.xlu0 %v2512_v46, %s2001_s22  ;;  %v2539_v49 = vld [vmem:[#allocation2 + $0x38] sm:$0xff] }
 0x292   :  { %v2518_v10 = vmax.f32 %v394_v11, 0.0  ;;  %v407_v15 = vmax.f32 %v395_v34, 0.0  ;;  %v2643_v34 = vand.u32 127, %v462_v23 }
 0x294   :  { %425 = vst.msk [vmem:[#allocation2 + $0x58] sm:$0xff] %vm167_vm1, %v407_v15  ;;  %v481_v15 = vsub.s32 0, %v480_v2  ;;  %vm464_vm2 = vcmp.lt.s32.totalorder %v2643_v34, 15  ;;  %vm585_vm3 = vcmp.lt.s32.totalorder %v2643_v34, 14  ;;  %vm670_vm4 = vcmp.lt.s32.totalorder %v2643_v34, 13 }
 0x295   :  { %1010 = vrot.lane.b32.xlu1 %v2460_v6, %s2006_s10  ;;  %1000 = vrot.lane.b32.xlu0 %v2474_v21, %s2006_s10  ;;  %vm780_vm5 = vcmp.lt.s32.totalorder %v2643_v34, 1  ;;  %vm925_vm6 = vcmp.lt.s32.totalorder %v2643_v34, 127  ;;  %vm1022_vm7 = vcmp.lt.s32.totalorder %v2643_v34, 115  ;;  %vm1119_vm8 = vcmp.lt.s32.totalorder %v2643_v34, 114 }
 0x296   :  { %vm1204_vm9 = vcmp.lt.s32.totalorder %v2643_v34, 113 }
 0x297   :  { %v2557_v33 = vld [vmem:[#allocation2 + $0x48] sm:$0xff] }
 0x299   :  { %452 = vrot.lane.b32.xlu1 %v2512_v46, %s2002_s30  ;;  %1182 = vrot.lane.b32.xlu0 %v2474_v21, %s2007_s11 }
 0x29b   :  { %v2567_v42 = vld [vmem:[#allocation2 + $0x58] sm:$0xff] }
 0x29d   :  { %575 = vrot.lane.b32.xlu1 %v2512_v46, %s2003_s7  ;;  %454 = vrot.lane.b32.xlu0 %v2529_v27, %s2002_s30 }
 0x2a1   :  { %660 = vrot.lane.b32.xlu1 %v2512_v46, %s2004_s8  ;;  %1099 = vrot.lane.b32.xlu0 %v2483_v35, %s2008_s12 }
 0x2a5   :  { %758 = vrot.lane.b32.xlu1 %v2474_v21, %s2001_s22  ;;  %456 = vrot.lane.b32.xlu0 %v2539_v49, %s2002_s30 }
 0x2a9   :  { %903 = vrot.lane.b32.xlu1 %v2474_v21, %s2005_s9  ;;  %567 = vrot.lane.b32.xlu0 %v2490_v0, %s2003_s7 }
 0x2ad   :  { %915 = vrot.lane.b32.xlu1 %v2512_v46, %s2005_s9  ;;  %446 = vrot.lane.b32.xlu0 %v2509_v41, %s2002_s30 }
 0x2b1   :  { %1012 = vrot.lane.b32.xlu1 %v2512_v46, %s2006_s10  ;;  %569 = vrot.lane.b32.xlu0 %v2509_v41, %s2003_s7 }
 0x2b5   :  { %1097 = vrot.lane.b32.xlu1 %v2474_v21, %s2008_s12  ;;  %921 = vrot.lane.b32.xlu0 %v2557_v33, %s2005_s9 }
 0x2b9   :  { %1109 = vrot.lane.b32.xlu1 %v2512_v46, %s2008_s12  ;;  %448 = vrot.lane.b32.xlu0 %v2518_v10, %s2002_s30 }
 0x2bd   :  { %442 = vrot.lane.b32.xlu1 %v2483_v35, %s2002_s30  ;;  %583 = vrot.lane.b32.xlu0 %v2567_v42, %s2003_s7 }
 0x2c1   :  { %565 = vrot.lane.b32.xlu1 %v2483_v35, %s2003_s7  ;;  %656 = vrot.lane.b32.xlu0 %v2518_v10, %s2004_s8 }
 0x2c5   :  { %577 = vrot.lane.b32.xlu1 %v2529_v27, %s2003_s7  ;;  %923 = vrot.lane.b32.xlu0 %v2567_v42, %s2005_s9 }
 0x2c9   :  { %650 = vrot.lane.b32.xlu1 %v2483_v35, %s2004_s8  ;;  %1008 = vrot.lane.b32.xlu0 %v2518_v10, %s2006_s10 }
 0x2cd   :  { %662 = vrot.lane.b32.xlu1 %v2529_v27, %s2004_s8  ;;  %1230 = vperm.xlu0 %1940, %v2146_v25  }
 0x2d1   :  { %760 = vrot.lane.b32.xlu1 %v2483_v35, %s2001_s22  ;;  %1107 = vrot.lane.b32.xlu0 %v2460_v6, %s2008_s12 }
 0x2d2   :  { %1942 = vset.pattern.permute.xlu0 %v3560_v30  ;;  %v485_v30 = vsub.s32 1, %v480_v2 }
 0x2d5   :  { %772 = vrot.lane.b32.xlu1 %v2529_v27, %s2001_s22  ;;  %1192 = vrot.lane.b32.xlu0 %v2460_v6, %s2007_s11 }
 0x2d9   :  { %905 = vrot.lane.b32.xlu1 %v2483_v35, %s2005_s9 }
 0x2dd   :  { %917 = vrot.lane.b32.xlu1 %v2529_v27, %s2005_s9 }
 0x2e1   :  { %1002 = vrot.lane.b32.xlu1 %v2483_v35, %s2006_s10 }
 0x2e3   :  { %v2605_v25 = vpop.permute.xlu1 %438 }
 0x2e4   :  { %3566 = vst [vmem:[#allocation23_spill] sm:$0xff] %v2605_v25 }
 0x2e5   :  { %1014 = vrot.lane.b32.xlu1 %v2529_v27, %s2006_s10 }
 0x2e9   :  { %1111 = vrot.lane.b32.xlu1 %v2529_v27, %s2008_s12 }
 0x2eb   :  { %v2609_v36 = vpop.permute.xlu1 %450  ;;  %v2617_v39 = vpop.permute.xlu0 %573 }
 0x2ec   :  { %3567 = vst [vmem:[#allocation24_spill] sm:$0xff] %v2609_v36  ;;  %3569 = vst [vmem:[#allocation26_spill] sm:$0xff] %v2617_v39 }
 0x2ed   :  { %1184 = vrot.lane.b32.xlu1 %v2483_v35, %s2007_s11 }
 0x2ef   :  { %v2613_v6 = vpop.permute.xlu1 %561  ;;  %v2625_v45 = vpop.permute.xlu0 %658 }
 0x2f0   :  { %3568 = vst [vmem:[#allocation25_spill] sm:$0xff] %v2613_v6  ;;  %3572 = vst [vmem:[#allocation29_spill] sm:$0xff] %v2625_v45 }
 0x2f1   :  { %1196 = vrot.lane.b32.xlu1 %v2529_v27, %s2007_s11 }
 0x2f3   :  { %v2619_v55 = vpop.permute.xlu1 %646  ;;  %v2633_v38 = vpop.permute.xlu0 %756 }
 0x2f4   :  { %3570 = vst [vmem:[#allocation27_spill] sm:$0xff] %v2619_v55  ;;  %3574 = vst [vmem:[#allocation31_spill] sm:$0xff] %v2633_v38 }
 0x2f5   :  { %444 = vrot.lane.b32.xlu1 %v2490_v0, %s2002_s30 }
 0x2f7   :  { %v2623_v57 = vpop.permute.xlu1 %768  ;;  %v441_v11 = vpop.permute.xlu0 %440 }
 0x2f8   :  { %3571 = vst [vmem:[#allocation28_spill] sm:$0xff] %v2623_v57 }
 0x2f9   :  { %579 = vrot.lane.b32.xlu1 %v2539_v49, %s2003_s7 }
 0x2fb   :  { %v2629_v24 = vpop.permute.xlu1 %901  ;;  %v564_v5 = vpop.permute.xlu0 %563 }
 0x2fc   :  { %3573 = vst [vmem:[#allocation30_spill] sm:$0xff] %v2629_v24 }
 0x2fd   :  { %652 = vrot.lane.b32.xlu1 %v2490_v0, %s2004_s8 }
 0x2ff   :  { %v2635_v63 = vpop.permute.xlu1 %913 }
 0x300   :  { %3575 = vst [vmem:[#allocation32_spill] sm:$0xff] %v2635_v63  ;;  %v477_v63 = vld [vmem:[%s3490_s5] ss:$2 sm:$0x3] }
 0x301   :  { %664 = vrot.lane.b32.xlu1 %v2539_v49, %s2004_s8  ;;  %v2655_v53 = vrot.slane %v477_v63, %v485_v30 }
 0x303   :  { %v2639_v29 = vpop.permute.xlu1 %998 }
 0x304   :  { %3576 = vst [vmem:[#allocation33_spill] sm:$0xff] %v2639_v29  ;;  %v2653_v29 = vrot.slane %v477_v63, %v481_v15  ;;  %v1886_v63 = vld [vmem:[%s3490_s5 + $0x1] ss:$2 sm:$0x3] }
 0x305   :  { %762 = vrot.lane.b32.xlu1 %v2490_v0, %s2001_s22  ;;  %v2679_v25 = vrot.slane %v1886_v63, %v481_v15  ;;  %v2681_v36 = vrot.slane %v1886_v63, %v485_v30 }
 0x307   :  { %v2645_v24 = vpop.permute.xlu1 %1010 }
 0x308   :  { %3577 = vst [vmem:[#allocation34_spill] sm:$0xff] %v2645_v24 }
 0x309   :  { %774 = vrot.lane.b32.xlu1 %v2539_v49, %s2001_s22 }
 0x30b   :  { %v453_v23 = vpop.permute.xlu1 %452 }
 0x30c   :  { %v466_v2 = vsel %vm464_vm2, %v441_v11, %v453_v23  ;;  %v472_v24 = vsel %vm464_vm2, %v453_v23, %v441_v11  ;;  %v649_v23 = vpop.permute.xlu0 %648 }
 0x30d   :  { %v491_v38 = vmul.f32 %v2653_v29, %v472_v24  ;;  %v492_v57 = vmul.f32 %v2655_v53, %v466_v2  ;;  %907 = vrot.lane.b32.xlu1 %v2490_v0, %s2005_s9 }
 0x30f   :  { %v576_v6 = vpop.permute.xlu1 %575  ;;  %v539_v24 = vmul.f32 %v2302_v47, %v491_v38  ;;  %v540_v2 = vmul.f32 %v2302_v47, %v492_v57 }
 0x310   :  { %v587_v39 = vsel %vm585_vm3, %v564_v5, %v576_v6  ;;  %v593_v11 = vsel %vm585_vm3, %v576_v6, %v564_v5  ;;  %v771_v30 = vpop.permute.xlu0 %770 }
 0x311   :  { %v624_v45 = vmul.f32 %v2448_v28, %v593_v11  ;;  %v625_v55 = vmul.f32 %v2448_v28, %v587_v39  ;;  %919 = vrot.lane.b32.xlu1 %v2539_v49, %s2005_s9 }
 0x313   :  { %v636_v22 = vadd.f32 %v624_v45, %v539_v24  ;;  %v637_v5 = vadd.f32 %v625_v55, %v540_v2  ;;  %v661_v6 = vpop.permute.xlu1 %660 }
 0x314   :  { %v672_v38 = vsel %vm670_vm4, %v649_v23, %v661_v6  ;;  %v678_v47 = vsel %vm670_vm4, %v661_v6, %v649_v23 }
 0x315   :  { %v698_v28 = vmul.f32 %v2679_v25, %v678_v47  ;;  %v699_v39 = vmul.f32 %v2681_v36, %v672_v38  ;;  %1004 = vrot.lane.b32.xlu1 %v2490_v0, %s2006_s10 }
 0x317   :  { %v734_v57 = vmul.f32 %v2311_v51, %v698_v28  ;;  %v735_v55 = vmul.f32 %v2311_v51, %v699_v39  ;;  %v759_v45 = vpop.permute.xlu1 %758 }
 0x318   :  { %v782_v15 = vsel %vm780_vm5, %v759_v45, %v771_v30  ;;  %v788_v63 = vsel %vm780_vm5, %v771_v30, %v759_v45  ;;  %v880_v45 = vmul.f32 %v2335_v1, %v2512_v46 }
 0x319   :  { %v746_v11 = vadd.f32 %v734_v57, %v636_v22  ;;  %v747_v23 = vadd.f32 %v735_v55, %v637_v5  ;;  %v795_v24 = vmul.f32 %v788_v63, %v2653_v29  ;;  %v796_v2 = vmul.f32 %v782_v15, %v2655_v53  ;;  %1016 = vrot.lane.b32.xlu1 %v2539_v49, %s2006_s10 }
 0x31a   :  { %v879_v22 = vmul.f32 %v2335_v1, %v2474_v21  ;;  %v1001_v21 = vpop.permute.xlu0 %1000 }
 0x31b   :  { %v831_v6 = vmul.f32 %v2331_v62, %v795_v24  ;;  %v832_v51 = vmul.f32 %v2331_v62, %v796_v2  ;;  %v904_v38 = vpop.permute.xlu1 %903 }
 0x31d   :  { %v843_v47 = vadd.f32 %v831_v6, %v746_v11  ;;  %v844_v28 = vadd.f32 %v832_v51, %v747_v23  ;;  %1101 = vrot.lane.b32.xlu1 %v2490_v0, %s2008_s12 }
 0x31f   :  { %v891_v5 = vadd.f32 %v879_v22, %v843_v47  ;;  %v916_v39 = vpop.permute.xlu1 %915  ;;  %v892_v2 = vadd.f32 %v880_v45, %v844_v28  ;;  %v2757_v45 = vpop.permute.xlu0 %1182 }
 0x320   :  { %v927_v30 = vsel %vm925_vm6, %v904_v38, %v916_v39  ;;  %v933_v57 = vsel %vm925_vm6, %v916_v39, %v904_v38  ;;  %3580 = vst [vmem:[#allocation37_spill] sm:$0xff] %v2757_v45 }
 0x321   :  { %v940_v62 = vmul.f32 %v927_v30, %v2679_v25  ;;  %v941_v55 = vmul.f32 %v933_v57, %v2681_v36  ;;  %1113 = vrot.lane.b32.xlu1 %v2539_v49, %s2008_s12 }
 0x323   :  { %v976_v15 = vmul.f32 %v2347_v13, %v940_v62  ;;  %v977_v63 = vmul.f32 %v2347_v13, %v941_v55  ;;  %v1013_v11 = vpop.permute.xlu1 %1012 }
 0x324   :  { %v1024_v23 = vsel %vm1022_vm7, %v1001_v21, %v1013_v11  ;;  %v1030_v24 = vsel %vm1022_vm7, %v1013_v11, %v1001_v21  ;;  %v455_v11 = vpop.permute.xlu0 %454 }
 0x325   :  { %v1037_v6 = vmul.f32 %v1024_v23, %v2653_v29  ;;  %v1038_v51 = vmul.f32 %v1030_v24, %v2655_v53  ;;  %1186 = vrot.lane.b32.xlu1 %v2490_v0, %s2007_s11  ;;  %v988_v1 = vadd.f32 %v976_v15, %v891_v5  ;;  %v989_v38 = vadd.f32 %v977_v63, %v892_v2 }
 0x327   :  { %v1073_v47 = vmul.f32 %v2410_v19, %v1037_v6  ;;  %v1074_v13 = vmul.f32 %v2410_v19, %v1038_v51  ;;  %v2733_v22 = vpop.permute.xlu1 %1097 }
 0x329   :  { %1198 = vrot.lane.b32.xlu1 %v2539_v49, %s2007_s11  ;;  %v2737_v39 = vadd.f32 %v1073_v47, %v988_v1  ;;  %v2739_v28 = vadd.f32 %v1074_v13, %v989_v38 }
 0x32b   :  { %3578 = vst [vmem:[#allocation35_spill] sm:$0xff] %v2737_v39  ;;  %3579 = vst [vmem:[#allocation36_spill] sm:$0xff] %v2739_v28  ;;  %v2741_v30 = vpop.permute.xlu1 %1109 }
 0x32d   :  { %458 = vrot.lane.b32.xlu1 %v2557_v33, %s2002_s30 }
 0x32f   :  { %v443_v5 = vpop.permute.xlu1 %442 }
 0x330   :  { %v467_v23 = vsel %vm464_vm2, %v443_v5, %v455_v11  ;;  %v473_v24 = vsel %vm464_vm2, %v455_v11, %v443_v5 }
 0x331   :  { %581 = vrot.lane.b32.xlu1 %v2557_v33, %s2003_s7  ;;  %v493_v5 = vmul.f32 %v2653_v29, %v473_v24  ;;  %v494_v11 = vmul.f32 %v2655_v53, %v467_v23 }
 0x333   :  { %v566_v57 = vpop.permute.xlu1 %565  ;;  %v542_v23 = vmul.f32 %v2291_v43, %v494_v11 }
 0x335   :  { %654 = vrot.lane.b32.xlu1 %v2509_v41, %s2004_s8 }
 0x337   :  { %v578_v19 = vpop.permute.xlu1 %577 }
 0x338   :  { %v588_v1 = vsel %vm585_vm3, %v566_v57, %v578_v19  ;;  %v594_v38 = vsel %vm585_vm3, %v578_v19, %v566_v57 }
 0x339   :  { %666 = vrot.lane.b32.xlu1 %v2557_v33, %s2004_s8  ;;  %v627_v57 = vmul.f32 %v2446_v7, %v588_v1 }
 0x33b   :  { %v651_v62 = vpop.permute.xlu1 %650 }
 0x33d   :  { %764 = vrot.lane.b32.xlu1 %v2509_v41, %s2001_s22 }
 0x33f   :  { %v663_v55 = vpop.permute.xlu1 %662 }
 0x340   :  { %v673_v2 = vsel %vm670_vm4, %v651_v62, %v663_v55  ;;  %v679_v6 = vsel %vm670_vm4, %v663_v55, %v651_v62  ;;  %v626_v55 = vmul.f32 %v2446_v7, %v594_v38  ;;  %v639_v38 = vadd.f32 %v627_v57, %v542_v23  ;;  %v1100_v23 = vpop.permute.xlu0 %1099 }
 0x341   :  { %776 = vrot.lane.b32.xlu1 %v2557_v33, %s2001_s22  ;;  %v700_v39 = vmul.f32 %v2679_v25, %v679_v6  ;;  %v701_v62 = vmul.f32 %v2681_v36, %v673_v2  ;;  %v881_v57 = vmul.f32 %v2325_v59, %v2483_v35 }
 0x343   :  { %v761_v21 = vpop.permute.xlu1 %760  ;;  %v736_v24 = vmul.f32 %v2305_v48, %v700_v39  ;;  %v737_v2 = vmul.f32 %v2305_v48, %v701_v62 }
 0x345   :  { %909 = vrot.lane.b32.xlu1 %v2509_v41, %s2005_s9  ;;  %v749_v11 = vadd.f32 %v737_v2, %v639_v38 }
 0x347   :  { %v773_v15 = vpop.permute.xlu1 %772 }
 0x348   :  { %v783_v47 = vsel %vm780_vm5, %v761_v21, %v773_v15  ;;  %v789_v13 = vsel %vm780_vm5, %v773_v15, %v761_v21  ;;  %v541_v15 = vmul.f32 %v2291_v43, %v493_v5 }
 0x349   :  { %1006 = vrot.lane.b32.xlu1 %v2509_v41, %s2006_s10  ;;  %v797_v19 = vmul.f32 %v789_v13, %v2653_v29  ;;  %v798_v28 = vmul.f32 %v783_v47, %v2655_v53 }
 0x34a   :  { %v638_v1 = vadd.f32 %v626_v55, %v541_v15 }
 0x34b   :  { %v906_v63 = vpop.permute.xlu1 %905  ;;  %v833_v47 = vmul.f32 %v2327_v60, %v797_v19  ;;  %v834_v13 = vmul.f32 %v2327_v60, %v798_v28  ;;  %v882_v19 = vmul.f32 %v2325_v59, %v2529_v27 }
 0x34c   :  { %v748_v5 = vadd.f32 %v736_v24, %v638_v1 }
 0x34d   :  { %1018 = vrot.lane.b32.xlu1 %v2557_v33, %s2006_s10 }
 0x34f   :  { %v918_v51 = vpop.permute.xlu1 %917 }
 0x350   :  { %v928_v6 = vsel %vm925_vm6, %v906_v63, %v918_v51  ;;  %v934_v7 = vsel %vm925_vm6, %v918_v51, %v906_v63  ;;  %v845_v63 = vadd.f32 %v833_v47, %v748_v5  ;;  %v846_v51 = vadd.f32 %v834_v13, %v749_v11 }
 0x351   :  { %1103 = vrot.lane.b32.xlu1 %v2509_v41, %s2008_s12  ;;  %v942_v62 = vmul.f32 %v928_v6, %v2679_v25  ;;  %v943_v45 = vmul.f32 %v934_v7, %v2681_v36 }
 0x352   :  { %v893_v24 = vadd.f32 %v881_v57, %v845_v63  ;;  %v894_v2 = vadd.f32 %v882_v19, %v846_v51 }
 0x353   :  { %v1003_v21 = vpop.permute.xlu1 %1002  ;;  %v979_v15 = vmul.f32 %v2343_v9, %v943_v45 }
 0x355   :  { %1115 = vrot.lane.b32.xlu1 %v2557_v33, %s2008_s12  ;;  %v991_v45 = vadd.f32 %v979_v15, %v894_v2  ;;  %v457_v2 = vpop.permute.xlu0 %456 }
 0x357   :  { %v1015_v43 = vpop.permute.xlu1 %1014 }
 0x358   :  { %v1025_v39 = vsel %vm1022_vm7, %v1003_v21, %v1015_v43  ;;  %v1031_v48 = vsel %vm1022_vm7, %v1015_v43, %v1003_v21  ;;  %v978_v21 = vmul.f32 %v2343_v9, %v942_v62 }
 0x359   :  { %1188 = vrot.lane.b32.xlu1 %v2509_v41, %s2007_s11  ;;  %v1039_v60 = vmul.f32 %v1025_v39, %v2653_v29  ;;  %v1040_v28 = vmul.f32 %v1031_v48, %v2655_v53 }
 0x35a   :  { %v990_v9 = vadd.f32 %v978_v21, %v893_v24 }
 0x35b   :  { %v1112_v55 = vpop.permute.xlu1 %1111  ;;  %v1075_v6 = vmul.f32 %v2408_v14, %v1039_v60  ;;  %v1076_v7 = vmul.f32 %v2408_v14, %v1040_v28 }
 0x35c   :  { %v1122_v59 = vsel %vm1119_vm8, %v1100_v23, %v1112_v55  ;;  %v1128_v27 = vsel %vm1119_vm8, %v1112_v55, %v1100_v23 }
 0x35d   :  { %1200 = vrot.lane.b32.xlu1 %v2557_v33, %s2007_s11  ;;  %v1087_v1 = vadd.f32 %v1075_v6, %v990_v9  ;;  %v1088_v38 = vadd.f32 %v1076_v7, %v991_v45  ;;  %v1160_v47 = vmul.f32 %v2432_v20, %v1122_v59  ;;  %v1161_v14 = vmul.f32 %v2432_v20, %v1128_v27  ;;  %v568_v45 = vpop.permute.xlu0 %567 }
 0x35f   :  { %v1185_v35 = vpop.permute.xlu1 %1184  ;;  %v1172_v11 = vadd.f32 %v1160_v47, %v1087_v1  ;;  %v1173_v62 = vadd.f32 %v1161_v14, %v1088_v38 }
 0x361   :  { %460 = vrot.lane.b32.xlu1 %v2567_v42, %s2002_s30 }
 0x363   :  { %v1197_v13 = vpop.permute.xlu1 %1196 }
 0x364   :  { %v1207_v43 = vsel %vm1204_vm9, %v1185_v35, %v1197_v13  ;;  %v1213_v39 = vsel %vm1204_vm9, %v1197_v13, %v1185_v35 }
 0x365   :  { %v1221_v48 = vmul.f32 %v1207_v43, %v2679_v25  ;;  %v1222_v5 = vmul.f32 %v1213_v39, %v2681_v36  ;;  %571 = vrot.lane.b32.xlu1 %v2518_v10, %s2003_s7 }
 0x367   :  { %v1257_v63 = vmul.f32 %v2442_v3, %v1221_v48  ;;  %v1258_v20 = vmul.f32 %v2442_v3, %v1222_v5  ;;  %v445_v51 = vpop.permute.xlu1 %444 }
 0x368   :  { %v468_v35 = vsel %vm464_vm2, %v445_v51, %v457_v2  ;;  %v474_v59 = vsel %vm464_vm2, %v457_v2, %v445_v51 }
 0x369   :  { %v2841_v60 = vadd.f32 %v1258_v20, %v1173_v62  ;;  %668 = vrot.lane.b32.xlu1 %v2567_v42, %s2004_s8  ;;  %v2845_v28 = vadd.f32 %v1257_v63, %v1172_v11  ;;  %v495_v13 = vmul.f32 %v2653_v29, %v474_v59  ;;  %v496_v43 = vmul.f32 %v2655_v53, %v468_v35 }
 0x36b   :  { %v580_v55 = vpop.permute.xlu1 %579  ;;  %v1291_v57 = vsel %vm167_vm1, %v2841_v60, 0.0  ;;  %v543_v51 = vmul.f32 %v2416_v52, %v495_v13 }
 0x36c   :  { %v1292_v19 = vadd.f32 %v1291_v57, %v2845_v28  ;;  %v589_v1 = vsel %vm585_vm3, %v568_v45, %v580_v55  ;;  %v595_v38 = vsel %vm585_vm3, %v580_v55, %v568_v45  ;;  %v544_v55 = vmul.f32 %v2416_v52, %v496_v43 }
 0x36d   :  { %766 = vrot.lane.b32.xlu1 %v2518_v10, %s2001_s22  ;;  %v628_v11 = vmul.f32 %v2284_v40, %v595_v38  ;;  %v629_v62 = vmul.f32 %v2284_v40, %v589_v1  ;;  %v883_v38 = vmul.f32 %v2317_v54, %v2490_v0 }
 0x36e   :  { %1293 = vadd.xlane.f32.xlu0 %v1292_v19 }
 0x36f   :  { %v653_v21 = vpop.permute.xlu1 %652 }
 0x371   :  { %778 = vrot.lane.b32.xlu1 %v2567_v42, %s2001_s22 }
 0x373   :  { %v665_v3 = vpop.permute.xlu1 %664 }
 0x374   :  { %v674_v27 = vsel %vm670_vm4, %v653_v21, %v665_v3  ;;  %v680_v9 = vsel %vm670_vm4, %v665_v3, %v653_v21 }
 0x375   :  { %911 = vrot.lane.b32.xlu1 %v2518_v10, %s2005_s9  ;;  %v702_v39 = vmul.f32 %v2679_v25, %v680_v9  ;;  %v703_v48 = vmul.f32 %v2681_v36, %v674_v27 }
 0x377   :  { %v763_v15 = vpop.permute.xlu1 %762  ;;  %v738_v57 = vmul.f32 %v2299_v12, %v702_v39  ;;  %v739_v19 = vmul.f32 %v2299_v12, %v703_v48 }
 0x379   :  { %1020 = vrot.lane.b32.xlu1 %v2567_v42, %s2006_s10 }
 0x37b   :  { %v775_v23 = vpop.permute.xlu1 %774 }
 0x37c   :  { %v784_v47 = vsel %vm780_vm5, %v763_v15, %v775_v23  ;;  %v790_v14 = vsel %vm780_vm5, %v775_v23, %v763_v15  ;;  %v640_v15 = vadd.f32 %v628_v11, %v543_v51  ;;  %v641_v23 = vadd.f32 %v629_v62, %v544_v55 }
 0x37d   :  { %1105 = vrot.lane.b32.xlu1 %v2518_v10, %s2008_s12  ;;  %v799_v63 = vmul.f32 %v790_v14, %v2653_v29  ;;  %v800_v20 = vmul.f32 %v784_v47, %v2655_v53 }
 0x37e   :  { %v750_v35 = vadd.f32 %v738_v57, %v640_v15  ;;  %v751_v59 = vadd.f32 %v739_v19, %v641_v23 }
 0x37f   :  { %v908_v24 = vpop.permute.xlu1 %907  ;;  %v835_v2 = vmul.f32 %v2323_v58, %v799_v63 }
 0x381   :  { %1117 = vrot.lane.b32.xlu1 %v2567_v42, %s2008_s12  ;;  %v847_v9 = vadd.f32 %v835_v2, %v750_v35 }
 0x383   :  { %v920_v6 = vpop.permute.xlu1 %919  ;;  %v895_v48 = vadd.f32 %v883_v38, %v847_v9 }
 0x384   :  { %v929_v3 = vsel %vm925_vm6, %v908_v24, %v920_v6  ;;  %v935_v40 = vsel %vm925_vm6, %v920_v6, %v908_v24 }
 0x385   :  { %1190 = vrot.lane.b32.xlu1 %v2518_v10, %s2007_s11  ;;  %v944_v27 = vmul.f32 %v929_v3, %v2679_v25  ;;  %v945_v24 = vmul.f32 %v935_v40, %v2681_v36 }
 0x387   :  { %v1005_v7 = vpop.permute.xlu1 %1004  ;;  %v980_v47 = vmul.f32 %v2329_v61, %v944_v27  ;;  %v981_v14 = vmul.f32 %v2329_v61, %v945_v24  ;;  %v447_v24 = vpop.permute.xlu0 %446 }
 0x389   :  { %1202 = vrot.lane.b32.xlu1 %v2567_v42, %s2007_s11  ;;  %v992_v11 = vadd.f32 %v980_v47, %v895_v48 }
 0x38b   :  { %v1017_v5 = vpop.permute.xlu1 %1016 }
 0x38c   :  { %v1026_v52 = vsel %vm1022_vm7, %v1005_v7, %v1017_v5  ;;  %v1032_v12 = vsel %vm1022_vm7, %v1017_v5, %v1005_v7  ;;  %v884_v7 = vmul.f32 %v2317_v54, %v2539_v49 }
 0x38d   :  { %1194 = vrot.lane.b32.xlu1 %v2512_v46, %s2007_s11  ;;  %v836_v46 = vmul.f32 %v2323_v58, %v800_v20  ;;  %v1041_v58 = vmul.f32 %v1026_v52, %v2653_v29  ;;  %v1042_v1 = vmul.f32 %v1032_v12, %v2655_v53 }
 0x38f   :  { %v1102_v21 = vpop.permute.xlu1 %1101  ;;  %v848_v45 = vadd.f32 %v836_v46, %v751_v59  ;;  %v1078_v0 = vmul.f32 %v2406_v17, %v1042_v1  ;;  %v570_v1 = vpop.permute.xlu0 %569 }
 0x391   :  { %1095 = vrot.lane.b32.xlu1 %v2454_v16, %s2008_s12  ;;  %v896_v5 = vadd.f32 %v884_v7, %v848_v45 }
 0x393   :  { %v1114_v6 = vpop.permute.xlu1 %1113  ;;  %v993_v62 = vadd.f32 %v981_v14, %v896_v5 }
 0x394   :  { %v1123_v43 = vsel %vm1119_vm8, %v1102_v21, %v1114_v6  ;;  %v1129_v39 = vsel %vm1119_vm8, %v1114_v6, %v1102_v21 }
 0x395   :  { %1180 = vrot.lane.b32.xlu1 %v2454_v16, %s2007_s11  ;;  %v1077_v16 = vmul.f32 %v2406_v17, %v1041_v58  ;;  %v1162_v54 = vmul.f32 %v2430_v18, %v1123_v43  ;;  %v1163_v49 = vmul.f32 %v2430_v18, %v1129_v39  ;;  %v1090_v55 = vadd.f32 %v1078_v0, %v993_v62 }
 0x397   :  { %v1187_v13 = vpop.permute.xlu1 %1186  ;;  %v1089_v51 = vadd.f32 %v1077_v16, %v992_v11  ;;  %v1175_v21 = vadd.f32 %v1163_v49, %v1090_v55 }
 0x399   :  { %v1174_v17 = vadd.f32 %v1162_v54, %v1089_v51  ;;  %v922_v51 = vpop.permute.xlu0 %921 }
 0x39b   :  { %v1199_v61 = vpop.permute.xlu1 %1198 }
 0x39c   :  { %v1208_v63 = vsel %vm1204_vm9, %v1187_v13, %v1199_v61  ;;  %v1214_v20 = vsel %vm1204_vm9, %v1199_v61, %v1187_v13 }
 0x39d   :  { %v1223_v57 = vmul.f32 %v1208_v63, %v2679_v25  ;;  %v1224_v19 = vmul.f32 %v1214_v20, %v2681_v36 }
 0x39f   :  { %v1259_v3 = vmul.f32 %v2440_v26, %v1223_v57  ;;  %v1260_v40 = vmul.f32 %v2440_v26, %v1224_v19  ;;  %v459_v18 = vpop.permute.xlu1 %458 }
 0x3a0   :  { %v469_v26 = vsel %vm464_vm2, %v447_v24, %v459_v18  ;;  %v475_v9 = vsel %vm464_vm2, %v459_v18, %v447_v24 }
 0x3a1   :  { %v2936_v15 = vadd.f32 %v1260_v40, %v1175_v21  ;;  %v2938_v23 = vadd.f32 %v1259_v3, %v1174_v17  ;;  %v497_v43 = vmul.f32 %v2653_v29, %v475_v9  ;;  %v498_v39 = vmul.f32 %v2655_v53, %v469_v26 }
 0x3a3   :  { %v582_v2 = vpop.permute.xlu1 %581  ;;  %v1295_v46 = vsel %vm167_vm1, %v2936_v15, 0.0  ;;  %v545_v49 = vmul.f32 %v2414_v32, %v497_v43  ;;  %v546_v61 = vmul.f32 %v2414_v32, %v498_v39 }
 0x3a4   :  { %v1296_v52 = vadd.f32 %v1295_v46, %v2938_v23  ;;  %v590_v7 = vsel %vm585_vm3, %v570_v1, %v582_v2  ;;  %v596_v47 = vsel %vm585_vm3, %v582_v2, %v570_v1 }
 0x3a5   :  { %v630_v16 = vmul.f32 %v2279_v37, %v596_v47  ;;  %v631_v0 = vmul.f32 %v2279_v37, %v590_v7 }
 0x3a6   :  { %1297 = vadd.xlane.f32.xlu0 %v1296_v52 }
 0x3a7   :  { %v655_v12 = vpop.permute.xlu1 %654  ;;  %v642_v55 = vadd.f32 %v630_v16, %v545_v49  ;;  %v643_v57 = vadd.f32 %v631_v0, %v546_v61 }
 0x3ab   :  { %v667_v35 = vpop.permute.xlu1 %666 }
 0x3ac   :  { %v675_v45 = vsel %vm670_vm4, %v655_v12, %v667_v35  ;;  %v681_v58 = vsel %vm670_vm4, %v667_v35, %v655_v12  ;;  %v885_v35 = vmul.f32 %v2308_v50, %v2509_v41 }
 0x3ad   :  { %v704_v48 = vmul.f32 %v2679_v25, %v681_v58  ;;  %v705_v5 = vmul.f32 %v2681_v36, %v675_v45 }
 0x3af   :  { %v765_v59 = vpop.permute.xlu1 %764  ;;  %v740_v63 = vmul.f32 %v2294_v44, %v704_v48  ;;  %v741_v20 = vmul.f32 %v2294_v44, %v705_v5 }
 0x3b1   :  { %v752_v40 = vadd.f32 %v740_v63, %v642_v55  ;;  %v753_v32 = vadd.f32 %v741_v20, %v643_v57 }
 0x3b3   :  { %v777_v27 = vpop.permute.xlu1 %776 }
 0x3b4   :  { %v785_v14 = vsel %vm780_vm5, %v765_v59, %v777_v27  ;;  %v791_v13 = vsel %vm780_vm5, %v777_v27, %v765_v59  ;;  %v886_v59 = vmul.f32 %v2308_v50, %v2557_v33 }
 0x3b5   :  { %v801_v11 = vmul.f32 %v791_v13, %v2653_v29  ;;  %v802_v62 = vmul.f32 %v785_v14, %v2655_v53 }
 0x3b7   :  { %v910_v6 = vpop.permute.xlu1 %909  ;;  %v837_v19 = vmul.f32 %v2319_v4, %v801_v11  ;;  %v838_v37 = vmul.f32 %v2319_v4, %v802_v62  ;;  %v3581_v11 = vld [vmem:[#allocation20_spill] sm:$0xff] }
 0x3b8   :  { %v930_v21 = vsel %vm925_vm6, %v910_v6, %v922_v51  ;;  %v936_v3 = vsel %vm925_vm6, %v922_v51, %v910_v6 }
 0x3b9   :  { %v849_v2 = vadd.f32 %v837_v19, %v752_v40  ;;  %v850_v46 = vadd.f32 %v838_v37, %v753_v32  ;;  %v946_v52 = vmul.f32 %v930_v21, %v2679_v25  ;;  %v947_v4 = vmul.f32 %v936_v3, %v2681_v36  ;;  %v449_v19 = vpop.permute.xlu0 %448  ;;  %v3582_v32 = vld [vmem:[#allocation24_spill] sm:$0xff] }
 0x3bb   :  { %v1007_v38 = vpop.permute.xlu1 %1006  ;;  %v897_v6 = vadd.f32 %v885_v35, %v849_v2  ;;  %v898_v26 = vadd.f32 %v886_v59, %v850_v46  ;;  %v982_v9 = vmul.f32 %v2321_v56, %v946_v52  ;;  %v983_v45 = vmul.f32 %v2321_v56, %v947_v4  ;;  %v3584_v52 = vld [vmem:[#allocation27_spill] sm:$0xff]  ;;  %v3585_v4 = vld [vmem:[#allocation29_spill] sm:$0xff] }
 0x3bd   :  { %v994_v33 = vadd.f32 %v982_v9, %v897_v6  ;;  %v995_v7 = vadd.f32 %v983_v45, %v898_v26  ;;  %v584_v3 = vpop.permute.xlu0 %583 }
 0x3bf   :  { %v1019_v54 = vpop.permute.xlu1 %1018 }
 0x3c0   :  { %v1027_v18 = vsel %vm1022_vm7, %v1007_v38, %v1019_v54  ;;  %v1033_v44 = vsel %vm1022_vm7, %v1019_v54, %v1007_v38 }
 0x3c1   :  { %v1043_v27 = vmul.f32 %v1027_v18, %v2653_v29  ;;  %v1044_v24 = vmul.f32 %v1033_v44, %v2655_v53  ;;  %v3583_v18 = vld [vmem:[#allocation23_spill] sm:$0xff]  ;;  %v657_v9 = vpop.permute.xlu0 %656 }
 0x3c2   :  { %v465_v44 = vsel %vm464_vm2, %v3583_v18, %v3582_v32  ;;  %v471_v2 = vsel %vm464_vm2, %v3582_v32, %v3583_v18 }
 0x3c3   :  { %v1104_v17 = vpop.permute.xlu1 %1103  ;;  %v1079_v38 = vmul.f32 %v2404_v31, %v1043_v27  ;;  %v1080_v50 = vmul.f32 %v2404_v31, %v1044_v24  ;;  %v489_v35 = vmul.f32 %v2653_v29, %v471_v2  ;;  %v490_v59 = vmul.f32 %v2655_v53, %v465_v44  ;;  %v3586_v27 = vld [vmem:[#allocation26_spill] sm:$0xff]  ;;  %v3587_v24 = vld [vmem:[#allocation25_spill] sm:$0xff]  ;;  %v3594_v2 = vld [vmem:[#allocation3_spill] sm:$0xff] }
 0x3c4   :  { %v586_v6 = vsel %vm585_vm3, %v3587_v24, %v3586_v27  ;;  %v592_v26 = vsel %vm585_vm3, %v3586_v27, %v3587_v24 }
 0x3c5   :  { %v1091_v39 = vadd.f32 %v1079_v38, %v994_v33  ;;  %v1092_v48 = vadd.f32 %v1080_v50, %v995_v7  ;;  %v671_v38 = vsel %vm670_vm4, %v3584_v52, %v3585_v4  ;;  %v3588_v33 = vld [vmem:[#allocation28_spill] sm:$0xff]  ;;  %v3589_v7 = vld [vmem:[#allocation31_spill] sm:$0xff] }
 0x3c7   :  { %v1116_v12 = vpop.permute.xlu1 %1115 }
 0x3c8   :  { %v1124_v1 = vsel %vm1119_vm8, %v1104_v17, %v1116_v12  ;;  %v1130_v41 = vsel %vm1119_vm8, %v1116_v12, %v1104_v17  ;;  %v677_v12 = vsel %vm670_vm4, %v3585_v4, %v3584_v52  ;;  %v3595_v4 = vld [vmem:[#allocation5_spill] sm:$0xff] }
 0x3c9   :  { %v1164_v47 = vmul.f32 %v2341_v8, %v1124_v1  ;;  %v1165_v14 = vmul.f32 %v2341_v8, %v1130_v41  ;;  %v696_v50 = vmul.f32 %v2679_v25, %v677_v12 }
 0x3cb   :  { %v1189_v58 = vpop.permute.xlu1 %1188  ;;  %v1176_v31 = vadd.f32 %v1164_v47, %v1091_v39  ;;  %v1177_v0 = vadd.f32 %v1165_v14, %v1092_v48  ;;  %v781_v47 = vsel %vm780_vm5, %v3589_v7, %v3588_v33  ;;  %v787_v14 = vsel %vm780_vm5, %v3588_v33, %v3589_v7 }
 0x3cc   :  { %v793_v18 = vmul.f32 %v787_v14, %v2653_v29  ;;  %v794_v44 = vmul.f32 %v781_v47, %v2655_v53  ;;  %v3598_v14 = vld [vmem:[#allocation32_spill] sm:$0xff] }
 0x3cf   :  { %v1201_v13 = vpop.permute.xlu1 %1200 }
 0x3d0   :  { %v1209_v56 = vsel %vm1204_vm9, %v1189_v58, %v1201_v13  ;;  %v1215_v43 = vsel %vm1204_vm9, %v1201_v13, %v1189_v58 }
 0x3d1   :  { %v1225_v5 = vmul.f32 %v1209_v56, %v2679_v25  ;;  %v1226_v16 = vmul.f32 %v1215_v43, %v2681_v36 }
 0x3d3   :  { %v1261_v62 = vmul.f32 %v3581_v11, %v1225_v5  ;;  %v1262_v54 = vmul.f32 %v3581_v11, %v1226_v16  ;;  %v461_v8 = vpop.permute.xlu1 %460  ;;  %v3590_v11 = vld [vmem:[#allocation17_spill] sm:$0xff] }
 0x3d4   :  { %v470_v45 = vsel %vm464_vm2, %v449_v19, %v461_v8  ;;  %v476_v58 = vsel %vm464_vm2, %v461_v8, %v449_v19 }
 0x3d5   :  { %v3007_v49 = vadd.f32 %v1261_v62, %v1176_v31  ;;  %v3009_v61 = vadd.f32 %v1262_v54, %v1177_v0  ;;  %v499_v5 = vmul.f32 %v2653_v29, %v476_v58  ;;  %v500_v16 = vmul.f32 %v2655_v53, %v470_v45  ;;  %v3591_v54 = vld [vmem:[#allocation22_spill] sm:$0xff] }
 0x3d6   :  { %v537_v62 = vmul.f32 %v3590_v11, %v489_v35  ;;  %v622_v8 = vmul.f32 %v3591_v54, %v592_v26 }
 0x3d7   :  { %v572_v63 = vpop.permute.xlu1 %571  ;;  %v1299_v20 = vsel %vm167_vm1, %v3009_v61, 0.0  ;;  %v1315_v51 = vmul.f32 %v3007_v49, %v3007_v49  ;;  %v1316_v57 = vmul.f32 %v3009_v61, %v3009_v61  ;;  %v548_v52 = vmul.f32 %v3594_v2, %v500_v16 }
 0x3d8   :  { %v1300_v55 = vadd.f32 %v1299_v20, %v3007_v49  ;;  %v591_v56 = vsel %vm585_vm3, %v572_v63, %v584_v3  ;;  %v597_v43 = vsel %vm585_vm3, %v584_v3, %v572_v63  ;;  %v623_v63 = vmul.f32 %v3591_v54, %v586_v6 }
 0x3d9   :  { %v1335_v37 = vsel %vm167_vm1, %v1316_v57, 0.0  ;;  %v697_v20 = vmul.f32 %v2681_v36, %v671_v38  ;;  %v538_v3 = vmul.f32 %v3590_v11, %v490_v59  ;;  %v634_v27 = vadd.f32 %v622_v8, %v537_v62  ;;  %v3597_v38 = vld [vmem:[#allocation11_spill] sm:$0xff] }
 0x3da   :  { %1301 = vadd.xlane.f32.xlu0 %v1300_v55  ;;  %v1336_v21 = vadd.f32 %v1335_v37, %v1315_v51  ;;  %v924_v51 = vpop.permute.xlu0 %923  ;;  %v3592_v55 = vld [vmem:[#allocation4_spill] sm:$0xff]  ;;  %v830_v47 = vmul.f32 %v3597_v38, %v794_v44 }
 0x3db   :  { %v669_v17 = vpop.permute.xlu1 %668  ;;  %v632_v57 = vmul.f32 %v3592_v55, %v597_v43  ;;  %v633_v19 = vmul.f32 %v3592_v55, %v591_v56  ;;  %v635_v24 = vadd.f32 %v623_v63, %v538_v3  ;;  %v3599_v56 = vld [vmem:[#allocation30_spill] sm:$0xff]  ;;  %v1989_v3 = vld [vmem:[#allocation2 + $0x8] sm:$0xff] }
 0x3dc   :  { %1337 = vadd.xlane.f32.xlu1 %v1336_v21  ;;  %v676_v1 = vsel %vm670_vm4, %v657_v9, %v669_v17  ;;  %v682_v41 = vsel %vm670_vm4, %v669_v17, %v657_v9  ;;  %v3596_v9 = vld [vmem:[#allocation6_spill] sm:$0xff]  ;;  %v926_v43 = vsel %vm925_vm6, %v3599_v56, %v3598_v14 }
 0x3dd   :  { %v706_v31 = vmul.f32 %v2679_v25, %v682_v41  ;;  %v707_v0 = vmul.f32 %v2681_v36, %v676_v1  ;;  %v645_v59 = vadd.f32 %v633_v19, %v548_v52 }
 0x3df   :  { %v767_v40 = vpop.permute.xlu1 %766  ;;  %v742_v12 = vmul.f32 %v3595_v4, %v706_v31  ;;  %v743_v35 = vmul.f32 %v3595_v4, %v707_v0  ;;  %v932_v31 = vsel %vm925_vm6, %v3598_v14, %v3599_v56 }
 0x3e3   :  { %v779_v46 = vpop.permute.xlu1 %778 }
 0x3e4   :  { %v786_v39 = vsel %vm780_vm5, %v767_v40, %v779_v46  ;;  %v792_v48 = vsel %vm780_vm5, %v779_v46, %v767_v40  ;;  %v3593_v40 = vld [vmem:[#allocation9_spill] sm:$0xff]  ;;  %v547_v46 = vmul.f32 %v3594_v2, %v499_v5  ;;  %v755_v5 = vadd.f32 %v743_v35, %v645_v59  ;;  %v3603_v35 = vld [vmem:[#allocation14_spill] sm:$0xff] }
 0x3e5   :  { %v803_v37 = vmul.f32 %v792_v48, %v2653_v29  ;;  %v804_v17 = vmul.f32 %v786_v39, %v2655_v53  ;;  %v732_v32 = vmul.f32 %v3593_v40, %v696_v50  ;;  %v733_v6 = vmul.f32 %v3593_v40, %v697_v20  ;;  %v1009_v39 = vpop.permute.xlu0 %1008  ;;  %v3601_v40 = vld [vmem:[#allocation12_spill] sm:$0xff] }
 0x3e6   :  { %v644_v26 = vadd.f32 %v632_v57, %v547_v46  ;;  %v829_v50 = vmul.f32 %v3597_v38, %v793_v18  ;;  %v938_v20 = vmul.f32 %v926_v43, %v2679_v25  ;;  %v1990_v18 = vld [vmem:[#allocation2] sm:$0xff]  ;;  %v939_v2 = vmul.f32 %v932_v31, %v2681_v36  ;;  %v3605_v38 = vld [vmem:[#allocation34_spill] sm:$0xff] }
 0x3e7   :  { %v912_v13 = vpop.permute.xlu1 %911  ;;  %v839_v45 = vmul.f32 %v3596_v9, %v803_v37  ;;  %v840_v58 = vmul.f32 %v3596_v9, %v804_v17  ;;  %v744_v41 = vadd.f32 %v732_v32, %v634_v27  ;;  %v745_v16 = vadd.f32 %v733_v6, %v635_v24  ;;  %v3604_v9 = vld [vmem:[#allocation15_spill] sm:$0xff]  ;;  %v3607_v43 = vld [vmem:[#allocation10_spill] sm:$0xff] }
 0x3e8   :  { %v931_v33 = vsel %vm925_vm6, %v912_v13, %v924_v51  ;;  %v937_v7 = vsel %vm925_vm6, %v924_v51, %v912_v13  ;;  %v754_v48 = vadd.f32 %v742_v12, %v644_v26  ;;  %v3600_v51 = vld [vmem:[#allocation7_spill] sm:$0xff]  ;;  %v878_v32 = vmul.f32 %v1989_v3, %v3601_v40 }
 0x3e9   :  { %v852_v62 = vadd.f32 %v840_v58, %v755_v5  ;;  %v948_v54 = vmul.f32 %v931_v33, %v2679_v25  ;;  %v949_v8 = vmul.f32 %v937_v7, %v2681_v36  ;;  %v887_v55 = vmul.f32 %v3600_v51, %v2518_v10  ;;  %v3602_v10 = vld [vmem:[#allocation8_spill] sm:$0xff] }
 0x3ea   :  { %v851_v11 = vadd.f32 %v839_v45, %v754_v48  ;;  %v888_v57 = vmul.f32 %v3600_v51, %v2567_v42  ;;  %v841_v19 = vadd.f32 %v829_v50, %v744_v41  ;;  %v842_v37 = vadd.f32 %v830_v47, %v745_v16  ;;  %v3606_v50 = vld [vmem:[#allocation33_spill] sm:$0xff]  ;;  %v3145_v47 = vpop.permute.xlu0 %1230 }
 0x3eb   :  { %v1021_v21 = vpop.permute.xlu1 %1020  ;;  %v877_v44 = vmul.f32 %v1990_v18, %v3601_v40  ;;  %v984_v4 = vmul.f32 %v3602_v10, %v948_v54  ;;  %v985_v42 = vmul.f32 %v3602_v10, %v949_v8  ;;  %v974_v27 = vmul.f32 %v3603_v35, %v938_v20  ;;  %v3610_v40 = vld [vmem:[#allocation37_spill] sm:$0xff]  ;;  %v3611_v10 = vld [vmem:[#allocation16_spill] sm:$0xff] }
 0x3ec   :  { %v1028_v0 = vsel %vm1022_vm7, %v1009_v39, %v1021_v21  ;;  %v1034_v13 = vsel %vm1022_vm7, %v1021_v21, %v1009_v39  ;;  %v899_v46 = vadd.f32 %v887_v55, %v851_v11  ;;  %v900_v52 = vadd.f32 %v888_v57, %v852_v62  ;;  %v3608_v55 = vld [vmem:[#allocation18_spill] sm:$0xff] }
 0x3ed   :  { %v1045_v17 = vmul.f32 %v1028_v0, %v2653_v29  ;;  %v1046_v21 = vmul.f32 %v1034_v13, %v2655_v53  ;;  %v890_v26 = vadd.f32 %v878_v32, %v842_v37  ;;  %v889_v59 = vadd.f32 %v877_v44, %v841_v19  ;;  %v3609_v19 = vld [vmem:[#allocation13_spill] sm:$0xff] }
 0x3ee   :  { %v975_v41 = vmul.f32 %v3603_v35, %v939_v2  ;;  %v1023_v33 = vsel %vm1022_vm7, %v3606_v50, %v3605_v38  ;;  %v1029_v7 = vsel %vm1022_vm7, %v3605_v38, %v3606_v50  ;;  %v996_v14 = vadd.f32 %v984_v4, %v899_v46  ;;  %v1108_v18 = vpop.permute.xlu0 %1107 }
 0x3ef   :  { %v1106_v1 = vpop.permute.xlu1 %1105  ;;  %v1081_v45 = vmul.f32 %v3604_v9, %v1045_v17  ;;  %v1082_v58 = vmul.f32 %v3604_v9, %v1046_v21  ;;  %v997_v56 = vadd.f32 %v985_v42, %v900_v52  ;;  %v986_v16 = vadd.f32 %v974_v27, %v889_v59 }
 0x3f0   :  { %v1121_v31 = vsel %vm1119_vm8, %v2733_v22, %v2741_v30  ;;  %v1035_v20 = vmul.f32 %v1023_v33, %v2653_v29  ;;  %v1036_v51 = vmul.f32 %v1029_v7, %v2655_v53  ;;  %v1314_v53 = vmul.f32 %v2936_v15, %v2936_v15  ;;  %v3614_v33 = vld [vmem:[#allocation35_spill] sm:$0xff] }
 0x3f1   :  { %v1093_v11 = vadd.f32 %v1081_v45, %v996_v14  ;;  %v1094_v62 = vadd.f32 %v1082_v58, %v997_v56  ;;  %v1158_v3 = vmul.f32 %v3608_v55, %v1121_v31  ;;  %v1313_v27 = vmul.f32 %v2938_v23, %v2938_v23 }
 0x3f2   :  { %v1071_v4 = vmul.f32 %v3611_v10, %v1035_v20  ;;  %v1072_v42 = vmul.f32 %v3611_v10, %v1036_v51  ;;  %v1331_v14 = vsel %vm167_vm1, %v1314_v53, 0.0  ;;  %v1312_v56 = vmul.f32 %v2841_v60, %v2841_v60 }
 0x3f3   :  { %v1118_v63 = vpop.permute.xlu1 %1117  ;;  %v1170_v7 = vadd.f32 %v1158_v3, %v3614_v33 }
 0x3f4   :  { %v1125_v24 = vsel %vm1119_vm8, %v1106_v1, %v1118_v63  ;;  %v1131_v6 = vsel %vm1119_vm8, %v1118_v63, %v1106_v1  ;;  %v1127_v1 = vsel %vm1119_vm8, %v2741_v30, %v2733_v22  ;;  %v987_v63 = vadd.f32 %v975_v41, %v890_v26 }
 0x3f5   :  { %v1166_v39 = vmul.f32 %v3607_v43, %v1125_v24  ;;  %v1167_v48 = vmul.f32 %v3607_v43, %v1131_v6  ;;  %v1159_v57 = vmul.f32 %v3608_v55, %v1127_v1  ;;  %v3613_v24 = vld [vmem:[#allocation21_spill] sm:$0xff] }
 0x3f6   :  { %v1084_v43 = vadd.f32 %v1072_v42, %v987_v63  ;;  %v1332_v63 = vadd.f32 %v1331_v14, %v1313_v27 }
 0x3f7   :  { %v1191_v12 = vpop.permute.xlu1 %1190  ;;  %v1178_v22 = vadd.f32 %v1166_v39, %v1093_v11  ;;  %v1179_v30 = vadd.f32 %v1167_v48, %v1094_v62  ;;  %v1083_v39 = vadd.f32 %v1071_v4, %v986_v16  ;;  %v3615_v48 = vld [vmem:[#allocation19_spill] sm:$0xff] }
 0x3fb   :  { %v1203_v5 = vpop.permute.xlu1 %1202 }
 0x3fc   :  { %v1210_v0 = vsel %vm1204_vm9, %v1191_v12, %v1203_v5  ;;  %v1216_v13 = vsel %vm1204_vm9, %v1203_v5, %v1191_v12  ;;  %v3612_v12 = vld [vmem:[#allocation36_spill] sm:$0xff] }
 0x3fd   :  { %v1227_v54 = vmul.f32 %v1210_v0, %v2679_v25  ;;  %v1228_v8 = vmul.f32 %v1216_v13, %v2681_v36  ;;  %v1171_v35 = vadd.f32 %v1159_v57, %v3612_v12  ;;  %v1193_v0 = vpop.permute.xlu0 %1192 }
 0x3ff   :  { %v1263_v37 = vmul.f32 %v3609_v19, %v1227_v54  ;;  %v1264_v17 = vmul.f32 %v3609_v19, %v1228_v8  ;;  %v1195_v21 = vpop.permute.xlu1 %1194  ;;  %v1311_v8 = vmul.f32 %v2845_v28, %v2845_v28 }
 0x400   :  { %v1206_v32 = vsel %vm1204_vm9, %v3610_v40, %v1195_v21  ;;  %v1212_v29 = vsel %vm1204_vm9, %v1195_v21, %v3610_v40 }
 0x401   :  { %v3173_v44 = vadd.f32 %v1263_v37, %v1178_v22  ;;  %v3175_v2 = vadd.f32 %v1264_v17, %v1179_v30  ;;  %v1219_v46 = vmul.f32 %v1206_v32, %v2679_v25  ;;  %v1220_v52 = vmul.f32 %v1212_v29, %v2681_v36  ;;  %v1294_v4 = vpop.xlane.xlu0 %1293 }
 0x402   :  { %v1327_v22 = vsel %vm167_vm1, %v1312_v56, 0.0 }
 0x403   :  { %v1255_v6 = vmul.f32 %v3613_v24, %v1219_v46  ;;  %v1256_v26 = vmul.f32 %v3613_v24, %v1220_v52  ;;  %v1096_v59 = vpop.permute.xlu1 %1095  ;;  %v1303_v9 = vsel %vm167_vm1, %v3175_v2, 0.0  ;;  %v1317_v45 = vmul.f32 %v3173_v44, %v3173_v44 }
 0x404   :  { %v1120_v58 = vsel %vm1119_vm8, %v1096_v59, %v1108_v18  ;;  %v1126_v41 = vsel %vm1119_vm8, %v1108_v18, %v1096_v59  ;;  %v1304_v38 = vadd.f32 %v1303_v9, %v3173_v44  ;;  %v1318_v50 = vmul.f32 %v3175_v2, %v3175_v2 }
 0x405   :  { %v3198_v1 = vadd.f32 %v1256_v26, %v1171_v35  ;;  %v1156_v5 = vmul.f32 %v3615_v48, %v1120_v58  ;;  %v3205_v13 = vadd.f32 %v1255_v6, %v1170_v7  ;;  %v1157_v11 = vmul.f32 %v3615_v48, %v1126_v41 }
 0x406   :  { %1305 = vadd.xlane.f32.xlu1 %v1304_v38  ;;  %v1339_v31 = vsel %vm167_vm1, %v1318_v50, 0.0  ;;  %v1328_v3 = vadd.f32 %v1327_v22, %v1311_v8  ;;  %v1345_v48 = vmul.f32 0.0051020407, %v1294_v4  ;;  %v3252_v4 = vld [vmem:[%s3489_s4 + $0x18] sm:$0xff] }
 0x407   :  { %v1181_v62 = vpop.permute.xlu1 %1180  ;;  %v1340_v54 = vadd.f32 %v1339_v31, %v1317_v45  ;;  %v1287_v51 = vsel %vm167_vm1, %v3198_v1, 0.0  ;;  %v1310_v30 = vmul.f32 %v3198_v1, %v3198_v1  ;;  %v1168_v19 = vadd.f32 %v1156_v5, %v1083_v39  ;;  %v3242_v45 = vld [vmem:[%s3489_s4 + $0x20] sm:$0xff] }
 0x408   :  { %v1205_v20 = vsel %vm1204_vm9, %v1181_v62, %v1193_v0  ;;  %v1211_v16 = vsel %vm1204_vm9, %v1193_v0, %v1181_v62  ;;  %v1169_v37 = vadd.f32 %v1157_v11, %v1084_v43  ;;  %v1288_v21 = vadd.f32 %v1287_v51, %v3205_v13 }
 0x409   :  { %v1217_v55 = vmul.f32 %v1205_v20, %v2679_v25  ;;  %v1218_v57 = vmul.f32 %v1211_v16, %v2681_v36  ;;  %1341 = vadd.xlane.f32.xlu0 %v1340_v54  ;;  %v1309_v25 = vmul.f32 %v3205_v13, %v3205_v13  ;;  %v1323_v32 = vsel %vm167_vm1, %v1310_v30, 0.0 }
 0x40a   :  { %1333 = vadd.xlane.f32.xlu1 %v1332_v63  ;;  %v1357_v16 = vmul.f32 %v1345_v48, %v1345_v48 }
 0x40b   :  { %v1253_v34 = vmul.f32 %v3145_v47, %v1217_v55  ;;  %v1254_v17 = vmul.f32 %v3145_v47, %v1218_v57  ;;  %v1324_v53 = vadd.f32 %v1323_v32, %v1309_v25 }
 0x40d   :  { %v3226_v36 = vadd.f32 %v1253_v34, %v1168_v19  ;;  %v3228_v40 = vadd.f32 %v1254_v17, %v1169_v37  ;;  %1289 = vadd.xlane.f32.xlu0 %v1288_v21 }
 0x40e   :  { %1329 = vadd.xlane.f32.xlu1 %v1328_v3 }
 0x40f   :  { %v1283_v29 = vsel %vm167_vm1, %v3228_v40, 0.0  ;;  %v1308_v47 = vmul.f32 %v3228_v40, %v3228_v40  ;;  %v1307_v46 = vmul.f32 %v3226_v36, %v3226_v36 }
 0x410   :  { %v1284_v18 = vadd.f32 %v1283_v29, %v3226_v36 }
 0x411   :  { %v1319_v52 = vsel %vm167_vm1, %v1308_v47, 0.0 }
 0x412   :  { %1325 = vadd.xlane.f32.xlu1 %v1324_v53  ;;  %1285 = vadd.xlane.f32.xlu0 %v1284_v18  ;;  %v1320_v10 = vadd.f32 %v1319_v52, %v1307_v46 }
 0x416   :  { %1321 = vadd.xlane.f32.xlu0 %v1320_v10 }
 0x42f   :  { %v1298_v42 = vpop.xlane.xlu0 %1297 }
 0x430   :  { %v1346_v33 = vmul.f32 0.0051020407, %v1298_v42 }
 0x432   :  { %v1358_v5 = vmul.f32 %v1346_v33, %v1346_v33 }
 0x463   :  { %v1302_v12 = vpop.xlane.xlu0 %1301 }
 0x464   :  { %v1347_v35 = vmul.f32 0.0051020407, %v1302_v12 }
 0x465   :  { %v1338_v24 = vpop.xlane.xlu1 %1337 }
 0x466   :  { %v1359_v27 = vmul.f32 %v1347_v35, %v1347_v35  ;;  %v1353_v6 = vmul.f32 0.0051020407, %v1338_v24 }
 0x468   :  { %v1365_v26 = vsub.f32 %v1353_v6, %v1359_v27 }
 0x46a   :  { %v1371_v59 = vmax.f32 %v1365_v26, 0.0 }
 0x46c   :  { %v1377_v9 = vadd.f32 1e-05, %v1371_v59  ;;  %v3264_v59 = vld [vmem:[%s3489_s4 + $0x10] sm:$0xff] }
 0x46e   :  { %1965 = vrsqrt.f32 %v1377_v9 }
 0x47b   :  { %v1966_v58 = vpop.eup %1965 }
 0x47c   :  { %v3245_v41 = vmul.f32 %v1966_v58, %v3242_v45 }
 0x47e   :  { %v1395_v38 = vmul.f32 %v3245_v41, %v1347_v35  ;;  %v3257_v35 = vld [vmem:[%s3489_s4 + $0x28] sm:$0xff] }
 0x480   :  { %1411 = vrot.lane.b32.xlu0 %v1395_v38, %s2001_s22 }
 0x48f   :  { %v1306_v50 = vpop.xlane.xlu1 %1305 }
 0x490   :  { %v1348_v7 = vmul.f32 0.0051020407, %v1306_v50  ;;  %v3271_v50 = vld [vmem:[%s3489_s4 + $0x8] sm:$0xff] }
 0x492   :  { %v1360_v14 = vmul.f32 %v1348_v7, %v1348_v7  ;;  %v1342_v56 = vpop.xlane.xlu0 %1341 }
 0x493   :  { %v1354_v43 = vmul.f32 0.0051020407, %v1342_v56  ;;  %v1334_v39 = vpop.xlane.xlu1 %1333 }
 0x494   :  { %v1352_v31 = vmul.f32 0.0051020407, %v1334_v39 }
 0x495   :  { %v1366_v0 = vsub.f32 %v1354_v43, %v1360_v14 }
 0x496   :  { %v1364_v11 = vsub.f32 %v1352_v31, %v1358_v5  ;;  %v1290_v62 = vpop.xlane.xlu0 %1289  ;;  %v3616_v31 = vmov 3  }
 0x497   :  { %v1372_v54 = vmax.f32 %v1366_v0, 0.0  ;;  %v1344_v8 = vmul.f32 0.0051020407, %v1290_v62  ;;  %v1330_v20 = vpop.xlane.xlu1 %1329 }
 0x498   :  { %v1370_v63 = vmax.f32 %v1364_v11, 0.0  ;;  %v1351_v51 = vmul.f32 0.0051020407, %v1330_v20  ;;  %v3617_v11 = vmov 2  }
 0x499   :  { %v1378_v55 = vadd.f32 1e-05, %v1372_v54  ;;  %v1356_v30 = vmul.f32 %v1344_v8, %v1344_v8 }
 0x49a   :  { %v1376_v57 = vadd.f32 1e-05, %v1370_v63  ;;  %v1363_v22 = vsub.f32 %v1351_v51, %v1357_v16 }
 0x49b   :  { %1967 = vrsqrt.f32 %v1378_v55  ;;  %v1326_v19 = vpop.xlane.xlu1 %1325  ;;  %v1286_v37 = vpop.xlane.xlu0 %1285 }
 0x49c   :  { %1969 = vrsqrt.f32 %v1376_v57  ;;  %v1369_v34 = vmax.f32 %v1363_v22, 0.0  ;;  %v1350_v17 = vmul.f32 0.0051020407, %v1326_v19  ;;  %v1343_v21 = vmul.f32 0.0051020407, %v1286_v37 }
 0x49d   :  { %v3618_v22 = vmov 4  }
 0x49e   :  { %v1375_v3 = vadd.f32 1e-05, %v1369_v34  ;;  %v1362_v25 = vsub.f32 %v1350_v17, %v1356_v30  ;;  %v1355_v47 = vmul.f32 %v1343_v21, %v1343_v21 }
 0x49f   :  { %v1322_v32 = vpop.xlane.xlu0 %1321 }
 0x4a0   :  { %1971 = vrsqrt.f32 %v1375_v3  ;;  %v1368_v29 = vmax.f32 %v1362_v25, 0.0  ;;  %v1349_v53 = vmul.f32 0.0051020407, %v1322_v32 }
 0x4a2   :  { %v1374_v18 = vadd.f32 1e-05, %v1368_v29  ;;  %v1361_v46 = vsub.f32 %v1349_v53, %v1355_v47 }
 0x4a4   :  { %1973 = vrsqrt.f32 %v1374_v18  ;;  %v1367_v52 = vmax.f32 %v1361_v46, 0.0 }
 0x4a6   :  { %v1373_v10 = vadd.f32 1e-05, %v1367_v52 }
 0x4a8   :  { %v1968_v42 = vpop.eup %1967  ;;  %1975 = vrsqrt.f32 %v1373_v10 }
 0x4a9   :  { %v1970_v12 = vpop.eup %1969  ;;  %v1390_v6 = vmul.f32 %v1968_v42, %v3257_v35 }
 0x4aa   :  { %v1388_v27 = vmul.f32 %v1970_v12, %v3252_v4 }
 0x4ab   :  { %v1396_v9 = vmul.f32 %v1390_v6, %v1348_v7 }
 0x4ac   :  { %v1394_v24 = vmul.f32 %v1388_v27, %v1346_v33  ;;  %v3277_v33 = vld [vmem:[%s3489_s4] sm:$0xff] }
 0x4ad   :  { %v1972_v26 = vpop.eup %1971 }
 0x4ae   :  { %1409 = vrot.lane.b32.xlu1 %v1394_v24, %s2001_s22  ;;  %v1387_v58 = vmul.f32 %v1972_v26, %v3264_v59 }
 0x4b0   :  { %v1393_v14 = vmul.f32 %v1387_v58, %v1345_v48 }
 0x4b1   :  { %v1974_v38 = vpop.eup %1973 }
 0x4b2   :  { %1413 = vrot.lane.b32.xlu1 %v1396_v9, %s2001_s22  ;;  %v1386_v56 = vmul.f32 %v1974_v38, %v3271_v50 }
 0x4b4   :  { %v1392_v39 = vmul.f32 %v1386_v56, %v1344_v8 }
 0x4b5   :  { %v1976_v43 = vpop.eup %1975 }
 0x4b6   :  { %1407 = vrot.lane.b32.xlu1 %v1393_v14, %s2001_s22  ;;  %v1385_v7 = vmul.f32 %v1976_v43, %v3277_v33  ;;  %v3619_v43 = vmov 0.0  }
 0x4b8   :  { %v1391_v5 = vmul.f32 %v1385_v7, %v1343_v21 }
 0x4ba   :  { %1405 = vrot.lane.b32.xlu1 %v1392_v39, %s2001_s22  ;;  %1403 = vrot.lane.b32.xlu0 %v1391_v5, %s2001_s22  ;;  %v1431_v39 = vld [vmem:[%s3491_s3 + $0x20] sm:$0xff]  ;;  %v1432_v5 = vld [vmem:[%s3491_s3 + $0x28] sm:$0xff] }
 0x4be   :  { %1460 = vperm.xlu1 %1941, %v1390_v6   ;;  %1455 = vperm.xlu0 %1942, %v3245_v41  }
 0x4c2   :  { %1450 = vperm.xlu1 %1941, %v1388_v27   ;;  %1944 = vset.pattern.permute.xlu0 %v3616_v31 }
 0x4c6   :  { %1445 = vperm.xlu1 %1941, %v1387_v58  }
 0x4ca   :  { %1943 = vset.pattern.permute.xlu1 %v3616_v31 }
 0x4f2   :  { %v1412_v48 = vpop.permute.xlu0 %1411 }
 0x4f3   :  { %v1425_v0 = vsub.f32 %v3242_v45, %v1412_v48 }
 0x4f5   :  { %1497 = vperm.xlu0 %1944, %v1425_v0  }
 0x4f9   :  { %1945 = vset.pattern.permute.xlu0 %v3617_v11 }
 0x4fa   :  { %1440 = vperm.xlu0 %1945, %v1386_v56  }
 0x4fe   :  { %1947 = vset.pattern.permute.xlu0 %v3616_v31 }
 0x520   :  { %v1410_v62 = vpop.permute.xlu1 %1409 }
 0x521   :  { %v1424_v54 = vsub.f32 %v3252_v4, %v1410_v62 }
 0x523   :  { %1492 = vperm.xlu1 %1943, %v1424_v54  }
 0x524   :  { %v1414_v41 = vpop.permute.xlu1 %1413 }
 0x525   :  { %v1426_v8 = vsub.f32 %v3257_v35, %v1414_v41 }
 0x527   :  { %1502 = vperm.xlu1 %1943, %v1426_v8  }
 0x528   :  { %v1408_v20 = vpop.permute.xlu1 %1407 }
 0x529   :  { %v1423_v16 = vsub.f32 %v3264_v59, %v1408_v20 }
 0x52b   :  { %1487 = vperm.xlu1 %1943, %v1423_v16  }
 0x52c   :  { %v1406_v63 = vpop.permute.xlu1 %1405  ;;  %v1404_v55 = vpop.permute.xlu0 %1403 }
 0x52d   :  { %v1422_v51 = vsub.f32 %v3271_v50, %v1406_v63  ;;  %v1421_v57 = vsub.f32 %v3277_v33, %v1404_v55 }
 0x52f   :  { %1946 = vset.pattern.permute.xlu1 %v3617_v11  ;;  %1482 = vperm.xlu0 %1947, %v1422_v51  }
 0x530   :  { %1435 = vperm.xlu1 %1946, %v1385_v7   ;;  %v1428_v7 = vld [vmem:[%s3491_s3 + $0x8] sm:$0xff] }
 0x533   :  { %1950 = vset.pattern.permute.xlu0 %v3618_v22 }
 0x534   :  { %1948 = vset.pattern.permute.xlu1 %v3616_v31 }
 0x535   :  { %1477 = vperm.xlu1 %1948, %v1421_v57  }
 0x539   :  { %1949 = vset.pattern.permute.xlu1 %v3618_v22  ;;  %v1461_v30 = vpop.permute.xlu1 %1460  ;;  %v1456_v34 = vpop.permute.xlu0 %1455 }
 0x53a   :  { %v1473_v3 = vmul.f32 %v1461_v30, %v3173_v44  ;;  %v1474_v25 = vmul.f32 %v1461_v30, %v3175_v2  ;;  %v1472_v29 = vmul.f32 %v1456_v34, %v3009_v61  ;;  %v1471_v18 = vmul.f32 %v1456_v34, %v3007_v49 }
 0x53d   :  { %v1451_v19 = vpop.permute.xlu1 %1450 }
 0x53e   :  { %v1470_v46 = vmul.f32 %v1451_v19, %v2936_v15  ;;  %v1469_v10 = vmul.f32 %v1451_v19, %v2938_v23 }
 0x541   :  { %v1446_v37 = vpop.permute.xlu1 %1445 }
 0x542   :  { %v1468_v44 = vmul.f32 %v1446_v37, %v2841_v60  ;;  %v1467_v61 = vmul.f32 %v1446_v37, %v2845_v28 }
 0x570   :  { %v1498_v21 = vpop.permute.xlu0 %1497 }
 0x571   :  { %v1514_v52 = vadd.f32 %v1498_v21, %v1472_v29  ;;  %v1513_v42 = vadd.f32 %v1498_v21, %v1471_v18 }
 0x575   :  { %v1441_v12 = vpop.permute.xlu0 %1440 }
 0x576   :  { %v1465_v49 = vmul.f32 %v1441_v12, %v3205_v13  ;;  %v1466_v15 = vmul.f32 %v1441_v12, %v3198_v1  ;;  %v1427_v1 = vld [vmem:[%s3491_s3] sm:$0xff] }
 0x59e   :  { %v1493_v17 = vpop.permute.xlu1 %1492 }
 0x59f   :  { %v1512_v2 = vadd.f32 %v1493_v17, %v1470_v46  ;;  %v1511_v24 = vadd.f32 %v1493_v17, %v1469_v10 }
 0x5a2   :  { %v1503_v32 = vpop.permute.xlu1 %1502 }
 0x5a3   :  { %v1516_v47 = vadd.f32 %v1503_v32, %v1474_v25  ;;  %v1515_v53 = vadd.f32 %v1503_v32, %v1473_v3 }
 0x5a5   :  { %1555 = vmatprep.subr.mxu1 %v1516_v47 }
 0x5a6   :  { %1556 = vmatpush1.msra.mxu1 %v1515_v53  ;;  %v1488_v27 = vpop.permute.xlu1 %1487 }
 0x5a7   :  { %1557 = vmatprep.subr.mxu1 %v1514_v52  ;;  %v1510_v6 = vadd.f32 %v1488_v27, %v1468_v44  ;;  %v1509_v26 = vadd.f32 %v1488_v27, %v1467_v61 }
 0x5a8   :  { %1558 = vmatpush1.msra.mxu1 %v1513_v42 }
 0x5a9   :  { %1559 = vmatprep.subr.mxu1 %v1512_v2 }
 0x5aa   :  { %1560 = vmatpush1.msra.mxu1 %v1511_v24  ;;  %v1483_v23 = vpop.permute.xlu0 %1482 }
 0x5ab   :  { %v1507_v9 = vadd.f32 %v1483_v23, %v1465_v49  ;;  %v1508_v58 = vadd.f32 %v1483_v23, %v1466_v15  ;;  %v1436_v38 = vpop.permute.xlu1 %1435  ;;  %1561 = vmatprep.subr.mxu1 %v1510_v6 }
 0x5ac   :  { %1562 = vmatpush1.msra.mxu1 %v1509_v26  ;;  %v1463_v60 = vmul.f32 %v1436_v38, %v3226_v36  ;;  %v1464_v28 = vmul.f32 %v1436_v38, %v3228_v40  ;;  %v1429_v36 = vld [vmem:[%s3491_s3 + $0x10] sm:$0xff]  ;;  %v1430_v40 = vld [vmem:[%s3491_s3 + $0x18] sm:$0xff] }
 0x5ad   :  { %1563 = vmatprep.subr.mxu1 %v1508_v58 }
 0x5ae   :  { %1564 = vmatpush1.msra.mxu1 %v1507_v9 }
 0x5b0   :  { %v1478_v14 = vpop.permute.xlu1 %1477 }
 0x5b1   :  { %v1505_v13 = vadd.f32 %v1478_v14, %v1463_v60  ;;  %v1506_v56 = vadd.f32 %v1478_v14, %v1464_v28 }
 0x5b3   :  { %1565 = vmatprep.subr.mxu1 %v1506_v56 }
 0x5b4   :  { %1566 = vmatpush1.msra.mxu1 %v1505_v13 }
 0x5b5   :  { %1887 = vmatmul.mubr.msk.f32.vlgmr.msra.gmra.mxu1 %vm41_vm0, %v1427_v1 }
 0x5b6   :  { %1605 = vmatprep.mubr.f32.mxu1 %v3619_v43 }
 0x5b9   :  { %1888 = vmatmul.mubr.msk.f32.gmra.mxu1 %vm41_vm0, %v1428_v7 }
 0x5ba   :  { %1611 = vmatprep.mubr.f32.mxu1 %v3619_v43 }
 0x5bd   :  { %1889 = vmatmul.mubr.msk.f32.gmra.mxu1 %vm41_vm0, %v1429_v36 }
 0x5be   :  { %1617 = vmatprep.mubr.f32.mxu1 %v3619_v43 }
 0x5c1   :  { %1890 = vmatmul.mubr.msk.f32.gmra.mxu1 %vm41_vm0, %v1430_v40 }
 0x5c2   :  { %1623 = vmatprep.mubr.f32.mxu1 %v3619_v43 }
 0x5c5   :  { %1891 = vmatmul.mubr.msk.f32.gmra.mxu1 %vm41_vm0, %v1431_v39 }
 0x5c6   :  { %1629 = vmatprep.mubr.f32.mxu1 %v3619_v43 }
 0x5c9   :  { %1892 = vmatmul.mubr.msk.f32.gmra.mxu1 %vm41_vm0, %v1432_v5 }
 0x675   :  { %v3340_v31 = vpop.f32.mrf.mxu1 }
 0x676   :  { %v1660_v8 = vmul.f32 %v3340_v31, %v3340_v31 }
 0x677   :  { %v3342_v48 = vpop.f32.mrf.mxu1 }
 0x678   :  { %v1636_v0 = vsel %vm167_vm1, %v3342_v48, 0.0  ;;  %v1661_v11 = vmul.f32 %v3342_v48, %v3342_v48 }
 0x679   :  { %v3348_v62 = vpop.f32.mrf.mxu1  ;;  %v1637_v54 = vadd.f32 %v1636_v0, %v3340_v31 }
 0x67a   :  { %v1672_v41 = vsel %vm167_vm1, %v1661_v11, 0.0  ;;  %v1662_v30 = vmul.f32 %v3348_v62, %v3348_v62 }
 0x67b   :  { %1638 = vadd.xlane.f32.xlu1 %v1637_v54  ;;  %v3354_v20 = vpop.f32.mrf.mxu1  ;;  %v1673_v55 = vadd.f32 %v1672_v41, %v1660_v8 }
 0x67c   :  { %v1640_v16 = vsel %vm167_vm1, %v3354_v20, 0.0  ;;  %v1663_v63 = vmul.f32 %v3354_v20, %v3354_v20 }
 0x67d   :  { %v3360_v51 = vpop.f32.mrf.mxu1  ;;  %v1641_v57 = vadd.f32 %v1640_v16, %v3348_v62 }
 0x67e   :  { %v1676_v22 = vsel %vm167_vm1, %v1663_v63, 0.0  ;;  %v1664_v19 = vmul.f32 %v3360_v51, %v3360_v51 }
 0x67f   :  { %1674 = vadd.xlane.f32.xlu1 %v1673_v55  ;;  %1642 = vadd.xlane.f32.xlu0 %v1641_v57  ;;  %v3368_v37 = vpop.f32.mrf.mxu1  ;;  %v1677_v21 = vadd.f32 %v1676_v22, %v1662_v30 }
 0x680   :  { %v1665_v34 = vmul.f32 %v3368_v37, %v3368_v37  ;;  %v1644_v3 = vsel %vm167_vm1, %v3368_v37, 0.0 }
 0x681   :  { %v3372_v17 = vpop.f32.mrf.mxu1  ;;  %v1645_v53 = vadd.f32 %v1644_v3, %v3360_v51 }
 0x682   :  { %v1680_v25 = vsel %vm167_vm1, %v1665_v34, 0.0  ;;  %v1666_v27 = vmul.f32 %v3372_v17, %v3372_v17 }
 0x683   :  { %1678 = vadd.xlane.f32.xlu0 %v1677_v21  ;;  %v3377_v32 = vpop.f32.mrf.mxu1  ;;  %v1681_v29 = vadd.f32 %v1680_v25, %v1664_v19 }
 0x684   :  { %v1648_v18 = vsel %vm167_vm1, %v3377_v32, 0.0  ;;  %v1667_v46 = vmul.f32 %v3377_v32, %v3377_v32 }
 0x685   :  { %v3379_v47 = vpop.f32.mrf.mxu1  ;;  %1682 = vadd.xlane.f32.xlu1 %v1681_v29  ;;  %v1649_v2 = vadd.f32 %v1648_v18, %v3372_v17 }
 0x686   :  { %v1668_v52 = vmul.f32 %v3379_v47, %v3379_v47  ;;  %v1684_v24 = vsel %vm167_vm1, %v1667_v46, 0.0 }
 0x687   :  { %1646 = vadd.xlane.f32.xlu0 %v1645_v53  ;;  %v3388_v10 = vpop.f32.mrf.mxu1  ;;  %v1685_v26 = vadd.f32 %v1684_v24, %v1666_v27 }
 0x688   :  { %v1652_v42 = vsel %vm167_vm1, %v3388_v10, 0.0  ;;  %v1669_v12 = vmul.f32 %v3388_v10, %v3388_v10 }
 0x689   :  { %v3396_v44 = vpop.f32.mrf.mxu1  ;;  %v1653_v61 = vadd.f32 %v1652_v42, %v3379_v47 }
 0x68a   :  { %v1688_v49 = vsel %vm167_vm1, %v1669_v12, 0.0  ;;  %v1670_v58 = vmul.f32 %v3396_v44, %v3396_v44 }
 0x68b   :  { %1650 = vadd.xlane.f32.xlu0 %v1649_v2  ;;  %1654 = vadd.xlane.f32.xlu1 %v1653_v61  ;;  %v3402_v15 = vpop.f32.mrf.mxu1  ;;  %v1689_v6 = vadd.f32 %v1688_v49, %v1668_v52 }
 0x68c   :  { %v1656_v23 = vsel %vm167_vm1, %v3402_v15, 0.0  ;;  %v1671_v9 = vmul.f32 %v3402_v15, %v3402_v15 }
 0x68d   :  { %v1657_v38 = vadd.f32 %v1656_v23, %v3396_v44 }
 0x68e   :  { %v1692_v60 = vsel %vm167_vm1, %v1671_v9, 0.0 }
 0x68f   :  { %1686 = vadd.xlane.f32.xlu0 %v1685_v26  ;;  %1690 = vadd.xlane.f32.xlu1 %v1689_v6  ;;  %v1693_v28 = vadd.f32 %v1692_v60, %v1670_v58 }
 0x693   :  { %1658 = vadd.xlane.f32.xlu0 %v1657_v38 }
 0x697   :  { %1694 = vadd.xlane.f32.xlu0 %v1693_v28 }
 0x704   :  { %v1639_v14 = vpop.xlane.xlu1 %1638 }
 0x705   :  { %v1696_v13 = vmul.f32 0.0051020407, %v1639_v14 }
 0x707   :  { %v1708_v43 = vmul.f32 %v1696_v13, %v1696_v13 }
 0x708   :  { %v1675_v56 = vpop.xlane.xlu1 %1674  ;;  %v1643_v1 = vpop.xlane.xlu0 %1642 }
 0x709   :  { %v1702_v7 = vmul.f32 0.0051020407, %v1675_v56  ;;  %v1697_v36 = vmul.f32 0.0051020407, %v1643_v1 }
 0x70b   :  { %v1714_v40 = vsub.f32 %v1702_v7, %v1708_v43  ;;  %v1709_v0 = vmul.f32 %v1697_v36, %v1697_v36 }
 0x70c   :  { %v1679_v39 = vpop.xlane.xlu0 %1678 }
 0x70d   :  { %v1720_v5 = vmax.f32 %v1714_v40, 0.0  ;;  %v1703_v11 = vmul.f32 0.0051020407, %v1679_v39 }
 0x70e   :  { %v1683_v54 = vpop.xlane.xlu1 %1682 }
 0x70f   :  { %v1726_v41 = vadd.f32 1e-05, %v1720_v5  ;;  %v1715_v8 = vsub.f32 %v1703_v11, %v1709_v0  ;;  %v1704_v22 = vmul.f32 0.0051020407, %v1683_v54 }
 0x710   :  { %v1647_v16 = vpop.xlane.xlu0 %1646 }
 0x711   :  { %1977 = vrsqrt.f32 %v1726_v41  ;;  %v1721_v63 = vmax.f32 %v1715_v8, 0.0  ;;  %v1698_v55 = vmul.f32 0.0051020407, %v1647_v16 }
 0x713   :  { %v1727_v57 = vadd.f32 1e-05, %v1721_v63  ;;  %v1710_v30 = vmul.f32 %v1698_v55, %v1698_v55 }
 0x714   :  { %v1651_v19 = vpop.xlane.xlu0 %1650  ;;  %v1655_v34 = vpop.xlane.xlu1 %1654 }
 0x715   :  { %1979 = vrsqrt.f32 %v1727_v57  ;;  %v1716_v21 = vsub.f32 %v1704_v22, %v1710_v30  ;;  %v1699_v3 = vmul.f32 0.0051020407, %v1651_v19  ;;  %v1700_v25 = vmul.f32 0.0051020407, %v1655_v34 }
 0x717   :  { %v1722_v29 = vmax.f32 %v1716_v21, 0.0  ;;  %v1712_v53 = vmul.f32 %v1700_v25, %v1700_v25  ;;  %v1711_v42 = vmul.f32 %v1699_v3, %v1699_v3 }
 0x718   :  { %v1687_v18 = vpop.xlane.xlu0 %1686  ;;  %v1691_v46 = vpop.xlane.xlu1 %1690 }
 0x719   :  { %v1728_v52 = vadd.f32 1e-05, %v1722_v29  ;;  %v1705_v12 = vmul.f32 0.0051020407, %v1687_v18  ;;  %v1706_v27 = vmul.f32 0.0051020407, %v1691_v46 }
 0x71b   :  { %1981 = vrsqrt.f32 %v1728_v52  ;;  %v1717_v2 = vsub.f32 %v1705_v12, %v1711_v42  ;;  %v1718_v61 = vsub.f32 %v1706_v27, %v1712_v53 }
 0x71c   :  { %v1659_v24 = vpop.xlane.xlu0 %1658 }
 0x71d   :  { %v1723_v49 = vmax.f32 %v1717_v2, 0.0  ;;  %v1724_v6 = vmax.f32 %v1718_v61, 0.0  ;;  %v1701_v26 = vmul.f32 0.0051020407, %v1659_v24 }
 0x71e   :  { %v1978_v23 = vpop.eup %1977 }
 0x71f   :  { %v1729_v9 = vadd.f32 1e-05, %v1723_v49  ;;  %v1730_v58 = vadd.f32 1e-05, %v1724_v6  ;;  %v1738_v38 = vmul.f32 %v1978_v23, %v3277_v33  ;;  %v1713_v28 = vmul.f32 %v1701_v26, %v1701_v26 }
 0x720   :  { %v1695_v60 = vpop.xlane.xlu0 %1694 }
 0x721   :  { %1983 = vrsqrt.f32 %v1729_v9  ;;  %v1707_v14 = vmul.f32 0.0051020407, %v1695_v60  ;;  %v1744_v56 = vmul.f32 %v1738_v38, %v1696_v13 }
 0x722   :  { %v1980_v1 = vpop.eup %1979  ;;  %1985 = vrsqrt.f32 %v1730_v58 }
 0x723   :  { %v1719_v43 = vsub.f32 %v1707_v14, %v1713_v28  ;;  %1756 = vrot.lane.b32.xlu1 %v1744_v56, %s2001_s22  ;;  %v1739_v7 = vmul.f32 %v1980_v1, %v3271_v50 }
 0x725   :  { %v1725_v40 = vmax.f32 %v1719_v43, 0.0  ;;  %v1745_v39 = vmul.f32 %v1739_v7, %v1697_v36 }
 0x727   :  { %v1731_v5 = vadd.f32 1e-05, %v1725_v40  ;;  %1758 = vrot.lane.b32.xlu0 %v1745_v39, %s2001_s22 }
 0x728   :  { %v1982_v0 = vpop.eup %1981 }
 0x729   :  { %v1740_v11 = vmul.f32 %v1982_v0, %v3264_v59  ;;  %1987 = vrsqrt.f32 %v1731_v5 }
 0x72b   :  { %v1746_v54 = vmul.f32 %v1740_v11, %v1698_v55  ;;  %v3620_v55 = vmov 5  }
 0x72d   :  { %1760 = vrot.lane.b32.xlu1 %v1746_v54, %s2001_s22 }
 0x72e   :  { %v1984_v13 = vpop.eup %1983 }
 0x72f   :  { %v1986_v41 = vpop.eup %1985  ;;  %v1741_v8 = vmul.f32 %v1984_v13, %v3252_v4 }
 0x730   :  { %v1742_v63 = vmul.f32 %v1986_v41, %v3242_v45 }
 0x731   :  { %v1747_v16 = vmul.f32 %v1741_v8, %v1699_v3 }
 0x732   :  { %v1748_v36 = vmul.f32 %v1742_v63, %v1700_v25 }
 0x733   :  { %1762 = vrot.lane.b32.xlu1 %v1747_v16, %s2001_s22 }
 0x736   :  { %v1988_v57 = vpop.eup %1987 }
 0x737   :  { %1764 = vrot.lane.b32.xlu1 %v1748_v36, %s2001_s22  ;;  %v1743_v22 = vmul.f32 %v1988_v57, %v3257_v35 }
 0x739   :  { %v1749_v30 = vmul.f32 %v1743_v22, %v1701_v26 }
 0x73b   :  { %1782 = vperm.xlu1 %1949, %v1738_v38   ;;  %1766 = vrot.lane.b32.xlu0 %v1749_v30, %s2001_s22 }
 0x73f   :  { %1792 = vperm.xlu1 %1949, %v1740_v11   ;;  %1787 = vperm.xlu0 %1950, %v1739_v7  }
 0x743   :  { %1797 = vperm.xlu1 %1949, %v1741_v8   ;;  %1802 = vperm.xlu0 %1950, %v1742_v63  }
 0x747   :  { %1807 = vperm.xlu1 %1949, %v1743_v22   ;;  %1951 = vset.pattern.permute.xlu0 %v3620_v55 }
 0x74b   :  { %1952 = vset.pattern.permute.xlu1 %v3620_v55 }
 0x795   :  { %v1757_v19 = vpop.permute.xlu1 %1756 }
 0x796   :  { %v1774_v34 = vsub.f32 %v3277_v33, %v1757_v19 }
 0x798   :  { %1824 = vperm.xlu0 %1951, %v1774_v34  }
 0x799   :  { %v1759_v21 = vpop.permute.xlu0 %1758 }
 0x79a   :  { %v1775_v3 = vsub.f32 %v3271_v50, %v1759_v21 }
 0x79c   :  { %1829 = vperm.xlu1 %1952, %v1775_v3  }
 0x79f   :  { %v1761_v25 = vpop.permute.xlu1 %1760 }
 0x7a0   :  { %v1776_v29 = vsub.f32 %v3264_v59, %v1761_v25 }
 0x7a2   :  { %1834 = vperm.xlu1 %1952, %v1776_v29  }
 0x7a5   :  { %v1763_v53 = vpop.permute.xlu1 %1762 }
 0x7a6   :  { %v1777_v18 = vsub.f32 %v3252_v4, %v1763_v53 }
 0x7a8   :  { %1839 = vperm.xlu0 %1951, %v1777_v18  }
 0x7a9   :  { %v1765_v46 = vpop.permute.xlu1 %1764 }
 0x7aa   :  { %v1778_v52 = vsub.f32 %v3242_v45, %v1765_v46 }
 0x7ac   :  { %1844 = vperm.xlu1 %1952, %v1778_v52  }
 0x7ad   :  { %v1767_v42 = vpop.permute.xlu0 %1766 }
 0x7ae   :  { %v1779_v33 = vsub.f32 %v3257_v35, %v1767_v42 }
 0x7b0   :  { %1849 = vperm.xlu0 %1951, %v1779_v33  }
 0x7b6   :  { %v1783_v12 = vpop.permute.xlu1 %1782 }
 0x7b7   :  { %v1810_v59 = vmul.f32 %v1783_v12, %v3340_v31  ;;  %v1811_v24 = vmul.f32 %v1783_v12, %v3342_v48 }
 0x7ba   :  { %v1793_v27 = vpop.permute.xlu1 %1792  ;;  %v1788_v50 = vpop.permute.xlu0 %1787 }
 0x7bb   :  { %v1812_v45 = vmul.f32 %v1788_v50, %v3348_v62  ;;  %v1813_v23 = vmul.f32 %v1788_v50, %v3354_v20  ;;  %v1814_v62 = vmul.f32 %v1793_v27, %v3360_v51  ;;  %v1815_v20 = vmul.f32 %v1793_v27, %v3368_v37 }
 0x7be   :  { %v1798_v2 = vpop.permute.xlu1 %1797  ;;  %v1803_v61 = vpop.permute.xlu0 %1802 }
 0x7bf   :  { %v1816_v60 = vmul.f32 %v1798_v2, %v3372_v17  ;;  %v1817_v28 = vmul.f32 %v1798_v2, %v3377_v32  ;;  %v1818_v37 = vmul.f32 %v1803_v61, %v3379_v47  ;;  %v1819_v1 = vmul.f32 %v1803_v61, %v3388_v10 }
 0x7c2   :  { %v1808_v49 = vpop.permute.xlu1 %1807 }
 0x7c3   :  { %v1820_v32 = vmul.f32 %v1808_v49, %v3396_v44  ;;  %v1821_v40 = vmul.f32 %v1808_v49, %v3402_v15 }
 0x813   :  { %v1825_v4 = vpop.permute.xlu0 %1824 }
 0x814   :  { %v1852_v6 = vadd.f32 %v1825_v4, %v1810_v59  ;;  %v1853_v26 = vadd.f32 %v1825_v4, %v1811_v24 }
 0x816   :  { %1864 = vst [vmem:[%s3492_s6] sm:$0xff] %v1852_v6  ;;  %1865 = vst.msk [vmem:[%s3492_s6 + $0x8] sm:$0xff] %vm167_vm1, %v1853_v26 }
 0x817   :  { %v1830_v35 = vpop.permute.xlu1 %1829 }
 0x818   :  { %v1854_v31 = vadd.f32 %v1830_v35, %v1812_v45  ;;  %v1855_v48 = vadd.f32 %v1830_v35, %v1813_v23 }
 0x81a   :  { %1866 = vst [vmem:[%s3492_s6 + $0x10] sm:$0xff] %v1854_v31  ;;  %1867 = vst.msk [vmem:[%s3492_s6 + $0x18] sm:$0xff] %vm167_vm1, %v1855_v48 }
 0x81d   :  { %v1835_v9 = vpop.permute.xlu1 %1834 }
 0x81e   :  { %v1856_v58 = vadd.f32 %v1835_v9, %v1814_v62  ;;  %v1857_v38 = vadd.f32 %v1835_v9, %v1815_v20 }
 0x820   :  { %1868 = vst [vmem:[%s3492_s6 + $0x20] sm:$0xff] %v1856_v58  ;;  %1869 = vst.msk [vmem:[%s3492_s6 + $0x28] sm:$0xff] %vm167_vm1, %v1857_v38 }
 0x823   :  { %v1840_v14 = vpop.permute.xlu0 %1839 }
 0x824   :  { %v1858_v51 = vadd.f32 %v1840_v14, %v1816_v60  ;;  %v1859_v56 = vadd.f32 %v1840_v14, %v1817_v28 }
 0x826   :  { %1870 = vst [vmem:[%s3492_s6 + $0x30] sm:$0xff] %v1858_v51  ;;  %1871 = vst.msk [vmem:[%s3492_s6 + $0x38] sm:$0xff] %vm167_vm1, %v1859_v56 }
 0x827   :  { %v1845_v43 = vpop.permute.xlu1 %1844 }
 0x828   :  { %v1860_v17 = vadd.f32 %v1845_v43, %v1818_v37  ;;  %v1861_v7 = vadd.f32 %v1845_v43, %v1819_v1 }
 0x82a   :  { %1872 = vst [vmem:[%s3492_s6 + $0x40] sm:$0xff] %v1860_v17  ;;  %1873 = vst.msk [vmem:[%s3492_s6 + $0x48] sm:$0xff] %vm167_vm1, %v1861_v7 }
 0x82b   :  { %v1850_v47 = vpop.permute.xlu0 %1849 }
 0x82c   :  { %v1862_v10 = vadd.f32 %v1850_v47, %v1820_v32  ;;  %v1863_v39 = vadd.f32 %v1850_v47, %v1821_v40 }
 0x82e   :  { %1874 = vst [vmem:[%s3492_s6 + $0x50] sm:$0xff] %v1862_v10  ;;  %1875 = vst.msk [vmem:[%s3492_s6 + $0x58] sm:$0xff] %vm167_vm1, %v1863_v39 }

</bundles_post_ra>
